<compile_context>
chip_gen: v7x
topology: tpu7x:2x2x1
jax: 0.10.0
libtpu: 0.0.40
codegen_flags: <defaults>
</compile_context>

<pallas_src>
import jax
import jax.numpy as jnp
from jax.experimental import pallas as pl
from jax.experimental.pallas import tpu as pltpu


def ffn_kernel(x_ref, w1_ref, b1_ref, w2_ref, b2_ref, alpha_ref,
               gamma_ref, beta_ref, o_ref, acc_ref):
    k = pl.program_id(1)

    @pl.when(k == 0)
    def _init():
        acc_ref[...] = jnp.zeros_like(acc_ref)

    # Linear 1 (dff chunk): (tm, D)bf16 @ (D, tk)bf16 -> (tm, tk) f32, plus bias chunk.
    h = jnp.dot(x_ref[...].astype(jnp.bfloat16), w1_ref[...],
                preferred_element_type=jnp.float32)
    h = h + b1_ref[...].astype(jnp.float32)

    # PReLU (single shared parameter, nn.PReLU() default) in f32 on the VPU.
    a = alpha_ref[0]
    h = jnp.where(h >= 0.0, h, a * h)

    # Linear 2 partial product: (tm, tk)bf16 @ (tk, D)bf16, accumulated in f32 scratch.
    acc_ref[...] += jnp.dot(h.astype(jnp.bfloat16), w2_ref[...],
                            preferred_element_type=jnp.float32)

    @pl.when(k == pl.num_programs(1) - 1)
    def _finalize():
        x = x_ref[...].astype(jnp.float32)
        # Dropout(p=0.0) is the identity (eval semantics).
        # TODO(synk): training-time dropout (p>0) would need pltpu.prng_seed/prng_random_bits.
        y = x + acc_ref[...] + b2_ref[...].astype(jnp.float32)
        mu = jnp.mean(y, axis=-1, keepdims=True)
        var = jnp.mean((y - mu) * (y - mu), axis=-1, keepdims=True)
        norm = (y - mu) * jax.lax.rsqrt(var + 1e-5)
        o_ref[...] = (norm * gamma_ref[...] + beta_ref[...]).astype(o_ref.dtype)


def position_wise_ffn(x, w1, b1, w2, b2, alpha, gamma, beta, *, tm=256, tk=256):
    """x: [B, S, D] float32. Returns [B, S, D]."""
    B, S, D = x.shape
    dff = w1.shape[1]
    tk = min(tk, dff)
    assert dff % tk == 0, "dff must be divisible by the dff chunk size"

    tokens = B * S
    num_m = pl.cdiv(tokens, tm)
    tokens_p = num_m * tm

    x2 = x.reshape(tokens, D)
    if tokens_p != tokens:
        x2 = jnp.pad(x2, ((0, tokens_p - tokens), (0, 0)))

    # bf16 operands for the MXU; biases / LayerNorm params stay f32.
    w1_b = w1.astype(jnp.bfloat16)
    w2_b = w2.astype(jnp.bfloat16)
    b1_2 = b1.reshape(1, dff)
    b2_2 = b2.reshape(1, D)
    alpha_1 = alpha.reshape(1).astype(jnp.float32)   # SMEM scalar
    gamma_2 = gamma.reshape(1, D)
    beta_2 = beta.reshape(1, D)

    grid = (num_m, dff // tk)

    out = pl.pallas_call(
        ffn_kernel,
        out_shape=jax.ShapeDtypeStruct((tokens_p, D), x.dtype),
        grid_spec=pltpu.PrefetchScalarGridSpec(
            num_scalar_prefetch=0,
            grid=grid,
            in_specs=[
                pl.BlockSpec((tm, D), lambda i, k: (i, 0)),        # x tile (resident across k)
                pl.BlockSpec((D, tk), lambda i, k: (0, k)),        # w1 column chunk (streams)
                pl.BlockSpec((1, tk), lambda i, k: (0, k)),        # b1 chunk (streams)
                pl.BlockSpec((tk, D), lambda i, k: (k, 0)),        # w2 row chunk (streams)
                pl.BlockSpec((1, D), lambda i, k: (0, 0),
                             pipeline_mode=pl.Buffered(1)),        # b2 (constant -> single buffer)
                pl.BlockSpec(memory_space=pltpu.MemorySpace.SMEM), # prelu alpha (scalar path)
                pl.BlockSpec((1, D), lambda i, k: (0, 0),
                             pipeline_mode=pl.Buffered(1)),        # ln gamma (constant)
                pl.BlockSpec((1, D), lambda i, k: (0, 0),
                             pipeline_mode=pl.Buffered(1)),        # ln beta (constant)
            ],
            out_specs=pl.BlockSpec((tm, D), lambda i, k: (i, 0)),
            scratch_shapes=[pltpu.VMEM((tm, D), jnp.float32)],     # f32 accumulator
        ),
        compiler_params=pltpu.CompilerParams(
            dimension_semantics=("parallel", "arbitrary"),
            vmem_limit_bytes=48 * 1024 * 1024),
    )(x2, w1_b, b1_2, w2_b, b2_2, alpha_1, gamma_2, beta_2)

    return out[:tokens].reshape(B, S, D)


def init_params(key, model_dim):
    """Deterministic parameter init mimicking PyTorch defaults (shapes are what matter)."""
    dff = model_dim * 4
    k1, k2, k3, k4 = jax.random.split(key, 4)
    lim1 = 1.0 / (model_dim ** 0.5)
    lim2 = 1.0 / (dff ** 0.5)
    # Stored transposed relative to torch (in_dim, out_dim) so the kernel does x @ w.
    w1 = jax.random.uniform(k1, (model_dim, dff), jnp.float32, -lim1, lim1)
    b1 = jax.random.uniform(k2, (dff,), jnp.float32, -lim1, lim1)
    w2 = jax.random.uniform(k3, (dff, model_dim), jnp.float32, -lim2, lim2)
    b2 = jax.random.uniform(k4, (model_dim,), jnp.float32, -lim2, lim2)
    alpha = jnp.array(0.25, jnp.float32)          # nn.PReLU default
    gamma = jnp.ones((model_dim,), jnp.float32)   # nn.LayerNorm weight
    beta = jnp.zeros((model_dim,), jnp.float32)   # nn.LayerNorm bias
    return w1, b1, w2, b2, alpha, gamma, beta


if __name__ == "__main__":
    key = jax.random.PRNGKey(0)
    kx, kp = jax.random.split(key)

    # Small demo: model_dim = 128 (dff = 512), 400 tokens (exercises tile padding).
    B, S, D = 2, 200, 128
    x = jax.random.normal(kx, (B, S, D), jnp.float32)
    params = init_params(kp, D)

    out = position_wise_ffn(x, *params)
    out = jax.block_until_ready(out)

    # Pure-JAX reference with the same mixed precision (bf16 matmul operands, f32 accum).
    w1, b1, w2, b2, alpha, gamma, beta = params
    x2 = x.reshape(-1, D)
    h = jnp.dot(x2.astype(jnp.bfloat16), w1.astype(jnp.bfloat16),
                preferred_element_type=jnp.float32) + b1
    h = jnp.where(h >= 0.0, h, alpha * h)
    o = jnp.dot(h.astype(jnp.bfloat16), w2.astype(jnp.bfloat16),
                preferred_element_type=jnp.float32) + b2
    y = x2 + o
    mu = jnp.mean(y, axis=-1, keepdims=True)
    var = jnp.mean((y - mu) ** 2, axis=-1, keepdims=True)
    ref = ((y - mu) * jax.lax.rsqrt(var + 1e-5) * gamma + beta).reshape(B, S, D)

    assert jnp.allclose(out, ref, atol=1e-2, rtol=1e-2), "mismatch vs reference"
    print("KERNEL_OK")
</pallas_src>

<mosaic_0001>
module attributes {stable_mosaic.version = 11 : i64} {
  func.func @ffn_kernel(%arg0: i32, %arg1: i32, %arg2: memref<256x128xf32, #tpu.memory_space<vmem>>, %arg3: memref<128x256xbf16, #tpu.memory_space<vmem>>, %arg4: memref<1x256xf32, #tpu.memory_space<vmem>>, %arg5: memref<256x128xbf16, #tpu.memory_space<vmem>>, %arg6: memref<1x128xf32, #tpu.memory_space<vmem>>, %arg7: memref<1xf32, #tpu.memory_space<smem>>, %arg8: memref<1x128xf32, #tpu.memory_space<vmem>>, %arg9: memref<1x128xf32, #tpu.memory_space<vmem>>, %arg10: memref<256x128xf32, #tpu.memory_space<vmem>>, %arg11: memref<256x128xf32, #tpu.memory_space<vmem>>) attributes {dimension_semantics = [#tpu.dimension_semantics<parallel>, #tpu.dimension_semantics<arbitrary>], iteration_bounds = array<i64: 2, 2>, scalar_prefetch = 0 : i64, scratch_operands = 1 : i64, tpu.core_type = #tpu.core_type<tc>, window_params = [{transform_indices = @transform_0, window_bounds = array<i64: 256, 128>}, {transform_indices = @transform_1, window_bounds = array<i64: 128, 256>}, {transform_indices = @transform_2, window_bounds = array<i64: 1, 256>}, {transform_indices = @transform_3, window_bounds = array<i64: 256, 128>}, {pipeline_mode = #tpu.pipeline_mode<synchronous>, transform_indices = @transform_4, window_bounds = array<i64: 1, 128>}, {transform_indices = @transform_5, window_bounds = array<i64: 1>}, {pipeline_mode = #tpu.pipeline_mode<synchronous>, transform_indices = @transform_6, window_bounds = array<i64: 1, 128>}, {pipeline_mode = #tpu.pipeline_mode<synchronous>, transform_indices = @transform_7, window_bounds = array<i64: 1, 128>}, {transform_indices = @transform_8, window_bounds = array<i64: 256, 128>}]} {
    %c0_i32 = arith.constant 0 : i32
    %0 = arith.cmpi eq, %arg1, %c0_i32 : i32
    %1 = arith.extui %0 : i1 to i32
    %c0_i32_0 = arith.constant 0 : i32
    %2 = arith.cmpi ne, %1, %c0_i32_0 : i32
    scf.if %2 {
      %cst_16 = arith.constant 0.000000e+00 : f32
      %25 = vector.broadcast %cst_16 : f32 to vector<256x128xf32>
      %c0_17 = arith.constant 0 : index
      %c0_18 = arith.constant 0 : index
      %26 = vector.load %arg11[%c0_17, %c0_18] : memref<256x128xf32, #tpu.memory_space<vmem>>, vector<256x128xf32>
      tpu.vector_store %arg11[%c0_17, %c0_18], %25 {strides = array<i32>} : memref<256x128xf32, #tpu.memory_space<vmem>>, vector<256x128xf32>,
    } else {
    }
    %c0 = arith.constant 0 : index
    %c0_1 = arith.constant 0 : index
    %3 = vector.load %arg2[%c0, %c0_1] : memref<256x128xf32, #tpu.memory_space<vmem>>, vector<256x128xf32>
    %4 = arith.truncf %3 : vector<256x128xf32> to vector<256x128xbf16>
    %c0_2 = arith.constant 0 : index
    %c0_3 = arith.constant 0 : index
    %5 = vector.load %arg3[%c0_2, %c0_3] : memref<128x256xbf16, #tpu.memory_space<vmem>>, vector<128x256xbf16>
    %cst = arith.constant dense<0.000000e+00> : vector<256x256xf32>
    %6 = tpu.matmul %4, %5, %cst {dimension_numbers = #tpu.dot_dimension_numbers<[1], [0], [0], [1], [0, 0, 1, 1], [], []>} : vector<256x128xbf16>, vector<128x256xbf16>, vector<256x256xf32> -> vector<256x256xf32>
    %c0_4 = arith.constant 0 : index
    %c0_5 = arith.constant 0 : index
    %7 = vector.load %arg4[%c0_4, %c0_5] : memref<1x256xf32, #tpu.memory_space<vmem>>, vector<1x256xf32>
    %8 = vector.broadcast %7 : vector<1x256xf32> to vector<256x256xf32>
    %9 = arith.addf %6, %8 : vector<256x256xf32>
    %c0_6 = arith.constant 0 : index
    %10 = memref.load %arg7[%c0_6] : memref<1xf32, #tpu.memory_space<smem>>
    %cst_7 = arith.constant 0.000000e+00 : f32
    %11 = vector.broadcast %cst_7 : f32 to vector<256x256xf32>
    %12 = arith.cmpf oge, %9, %11 : vector<256x256xf32>
    %13 = vector.broadcast %10 : f32 to vector<256x256xf32>
    %14 = arith.mulf %13, %9 : vector<256x256xf32>
    %15 = arith.select %12, %9, %14 : vector<256x256xi1>, vector<256x256xf32>
    %c0_8 = arith.constant 0 : index
    %c0_9 = arith.constant 0 : index
    %16 = vector.load %arg11[%c0_8, %c0_9] : memref<256x128xf32, #tpu.memory_space<vmem>>, vector<256x128xf32>
    %17 = arith.truncf %15 : vector<256x256xf32> to vector<256x256xbf16>
    %c0_10 = arith.constant 0 : index
    %c0_11 = arith.constant 0 : index
    %18 = vector.load %arg5[%c0_10, %c0_11] : memref<256x128xbf16, #tpu.memory_space<vmem>>, vector<256x128xbf16>
    %cst_12 = arith.constant dense<0.000000e+00> : vector<256x128xf32>
    %19 = tpu.matmul %17, %18, %cst_12 {dimension_numbers = #tpu.dot_dimension_numbers<[1], [0], [0], [1], [0, 0, 1, 1], [], []>} : vector<256x256xbf16>, vector<256x128xbf16>, vector<256x128xf32> -> vector<256x128xf32>
    %20 = arith.addf %16, %19 : vector<256x128xf32>
    %c0_13 = arith.constant 0 : index
    %c0_14 = arith.constant 0 : index
    %21 = vector.load %arg11[%c0_13, %c0_14] : memref<256x128xf32, #tpu.memory_space<vmem>>, vector<256x128xf32>
    tpu.vector_store %arg11[%c0_13, %c0_14], %20 {strides = array<i32>} : memref<256x128xf32, #tpu.memory_space<vmem>>, vector<256x128xf32>,
    %c1_i32 = arith.constant 1 : i32
    %22 = arith.cmpi eq, %arg1, %c1_i32 : i32
    %23 = arith.extui %22 : i1 to i32
    %c0_i32_15 = arith.constant 0 : i32
    %24 = arith.cmpi ne, %23, %c0_i32_15 : i32
    scf.if %24 {
      %c0_16 = arith.constant 0 : index
      %c0_17 = arith.constant 0 : index
      %25 = vector.load %arg2[%c0_16, %c0_17] : memref<256x128xf32, #tpu.memory_space<vmem>>, vector<256x128xf32>
      %c0_18 = arith.constant 0 : index
      %c0_19 = arith.constant 0 : index
      %26 = vector.load %arg11[%c0_18, %c0_19] : memref<256x128xf32, #tpu.memory_space<vmem>>, vector<256x128xf32>
      %27 = arith.addf %25, %26 : vector<256x128xf32>
      %c0_20 = arith.constant 0 : index
      %c0_21 = arith.constant 0 : index
      %28 = vector.load %arg6[%c0_20, %c0_21] : memref<1x128xf32, #tpu.memory_space<vmem>>, vector<1x128xf32>
      %29 = vector.broadcast %28 : vector<1x128xf32> to vector<256x128xf32>
      %30 = arith.addf %27, %29 : vector<256x128xf32>
      %cst_22 = arith.constant dense<0.000000e+00> : vector<256xf32>
      %31 = vector.multi_reduction <add>, %30, %cst_22 [1] : vector<256x128xf32> to vector<256xf32>
      %32 = vector.shape_cast %31 : vector<256xf32> to vector<256x1xf32>
      %cst_23 = arith.constant 1.280000e+02 : f32
      %33 = vector.broadcast %cst_23 : f32 to vector<256x1xf32>
      %34 = arith.divf %32, %33 : vector<256x1xf32>
      %35 = vector.broadcast %34 : vector<256x1xf32> to vector<256x128xf32>
      %36 = arith.subf %30, %35 : vector<256x128xf32>
      %37 = vector.broadcast %34 : vector<256x1xf32> to vector<256x128xf32>
      %38 = arith.subf %30, %37 : vector<256x128xf32>
      %39 = arith.mulf %36, %38 : vector<256x128xf32>
      %cst_24 = arith.constant dense<0.000000e+00> : vector<256xf32>
      %40 = vector.multi_reduction <add>, %39, %cst_24 [1] : vector<256x128xf32> to vector<256xf32>
      %41 = vector.shape_cast %40 : vector<256xf32> to vector<256x1xf32>
      %cst_25 = arith.constant 1.280000e+02 : f32
      %42 = vector.broadcast %cst_25 : f32 to vector<256x1xf32>
      %43 = arith.divf %41, %42 : vector<256x1xf32>
      %44 = vector.broadcast %34 : vector<256x1xf32> to vector<256x128xf32>
      %45 = arith.subf %30, %44 : vector<256x128xf32>
      %cst_26 = arith.constant 9.99999974E-6 : f32
      %46 = vector.broadcast %cst_26 : f32 to vector<256x1xf32>
      %47 = arith.addf %43, %46 : vector<256x1xf32>
      %48 = math.rsqrt %47 : vector<256x1xf32>
      %49 = vector.broadcast %48 : vector<256x1xf32> to vector<256x128xf32>
      %50 = arith.mulf %45, %49 : vector<256x128xf32>
      %c0_27 = arith.constant 0 : index
      %c0_28 = arith.constant 0 : index
      %51 = vector.load %arg8[%c0_27, %c0_28] : memref<1x128xf32, #tpu.memory_space<vmem>>, vector<1x128xf32>
      %52 = vector.broadcast %51 : vector<1x128xf32> to vector<256x128xf32>
      %53 = arith.mulf %50, %52 : vector<256x128xf32>
      %c0_29 = arith.constant 0 : index
      %c0_30 = arith.constant 0 : index
      %54 = vector.load %arg9[%c0_29, %c0_30] : memref<1x128xf32, #tpu.memory_space<vmem>>, vector<1x128xf32>
      %55 = vector.broadcast %54 : vector<1x128xf32> to vector<256x128xf32>
      %56 = arith.addf %53, %55 : vector<256x128xf32>
      %c0_31 = arith.constant 0 : index
      %c0_32 = arith.constant 0 : index
      %57 = vector.load %arg10[%c0_31, %c0_32] : memref<256x128xf32, #tpu.memory_space<vmem>>, vector<256x128xf32>
      tpu.vector_store %arg10[%c0_31, %c0_32], %56 {strides = array<i32>} : memref<256x128xf32, #tpu.memory_space<vmem>>, vector<256x128xf32>,
    } else {
    }
    return
  }
  func.func @transform_0(%arg0: i32, %arg1: i32) -> (i32, i32) {
    %c0_i32 = arith.constant 0 : i32
    %c0_i32_0 = arith.constant 0 : i32
    return %arg0, %c0_i32 : i32, i32
  }
  func.func @transform_1(%arg0: i32, %arg1: i32) -> (i32, i32) {
    %c0_i32 = arith.constant 0 : i32
    %c0_i32_0 = arith.constant 0 : i32
    return %c0_i32, %arg1 : i32, i32
  }
  func.func @transform_2(%arg0: i32, %arg1: i32) -> (i32, i32) {
    %c0_i32 = arith.constant 0 : i32
    %c0_i32_0 = arith.constant 0 : i32
    return %c0_i32, %arg1 : i32, i32
  }
  func.func @transform_3(%arg0: i32, %arg1: i32) -> (i32, i32) {
    %c0_i32 = arith.constant 0 : i32
    %c0_i32_0 = arith.constant 0 : i32
    return %arg1, %c0_i32 : i32, i32
  }
  func.func @transform_4(%arg0: i32, %arg1: i32) -> (i32, i32) {
    %c0_i32 = arith.constant 0 : i32
    %c0_i32_0 = arith.constant 0 : i32
    %c0_i32_1 = arith.constant 0 : i32
    return %c0_i32, %c0_i32_0 : i32, i32
  }
  func.func @transform_5(%arg0: i32, %arg1: i32) -> i32 {
    %c0_i32 = arith.constant 0 : i32
    %c0_i32_0 = arith.constant 0 : i32
    return %c0_i32 : i32
  }
  func.func @transform_6(%arg0: i32, %arg1: i32) -> (i32, i32) {
    %c0_i32 = arith.constant 0 : i32
    %c0_i32_0 = arith.constant 0 : i32
    %c0_i32_1 = arith.constant 0 : i32
    return %c0_i32, %c0_i32_0 : i32, i32
  }
  func.func @transform_7(%arg0: i32, %arg1: i32) -> (i32, i32) {
    %c0_i32 = arith.constant 0 : i32
    %c0_i32_0 = arith.constant 0 : i32
    %c0_i32_1 = arith.constant 0 : i32
    return %c0_i32, %c0_i32_0 : i32, i32
  }
  func.func @transform_8(%arg0: i32, %arg1: i32) -> (i32, i32) {
    %c0_i32 = arith.constant 0 : i32
    %c0_i32_0 = arith.constant 0 : i32
    return %arg0, %c0_i32 : i32, i32
  }
}

</mosaic_0001>

<bundles_post_ra>
// kernel: tpu_custom_call.1
= control target key start
LH: loop header
LB: loop body
LE: loop exit
PB: predicated region body
PF: predicated region fallthrough
CT: control target
= control target key end

     0   :  { %s3922_s0 = inlined_call_operand.hbm [shape: f32[512,128], index: 0, kind: input, shape index: {}]   ;;  %s3923_s1 = inlined_call_operand.hbm [shape: bf16[128,512], index: 1, kind: input, shape index: {}]   ;;  %s3924_s2 = inlined_call_operand.vmem [shape: f32[1,512], index: 2, kind: input, shape index: {}]   ;;  %s3925_s3 = inlined_call_operand.hbm [shape: bf16[512,128], index: 3, kind: input, shape index: {}]   ;;  %s3926_s4 = inlined_call_operand.vmem [shape: f32[1,128], index: 4, kind: input, shape index: {}]   ;;  %s3927_s5 = inlined_call_operand.<no memory space> [shape: f32[1], index: 5, kind: input, shape index: {}]   ;;  %s3928_s6 = inlined_call_operand.vmem [shape: f32[1,128], index: 6, kind: input, shape index: {}]   ;;  %s3929_s7 = inlined_call_operand.vmem [shape: f32[1,128], index: 7, kind: input, shape index: {}]   ;;  %s3930_s8 = inlined_call_operand.hbm [shape: f32[512,128], index: 8, kind: output, shape index: {}]  }
   0x1   :  { %3945 = sst [smem:[#allocation22_spill]] %s3923_s1 }
   0x2   :  { %3946 = sst [smem:[#allocation23_spill]] %s3926_s4 }
   0x3   :  { %3947 = sst [smem:[#allocation24_spill]] %s3928_s6 }
   0x4   :  { %3948 = sst [smem:[#allocation25_spill]] %s3929_s7 }
   0x5   :  { %3949 = sst [smem:[#allocation26_spill]] %s3930_s8 }
   0x6   :  { %13 = sst [smem:[#allocation3]] %s3927_s5 }
   0x7   :  { %14 = vsyncpa [#allocation5], 0 }
   0x8   :  { %16 = vsyncpa [#allocation5 + $0x1], 0 }
   0x9   :  { %17 = vsyncpa [#allocation8], 0 }
   0xa   :  { %19 = vsyncpa [#allocation8 + $0x1], 0 }
   0xb   :  { %20 = vsyncpa [#allocation6], 0 }
   0xc   :  { %22 = vsyncpa [#allocation6 + $0x1], 0  ;;  %s2867_s29 = smov 0   ;;  %s2869_s30 = smov 0  }
   0xd   :  { %s2871_s9 = smov 0   ;;  %s2873_s10 = smov 0  }
   0xe   :  { %s2875_s11 = smov 0   ;;  %s2877_s12 = smov 0  }
   0xf   :  { %s2879_s13 = smov 0   ;;  %s2881_s5 = smov 0  }
  0x10   :  { %s2883_s14 = smov 0   ;;  %s2885_s15 = smov 0  }
  0x11   :  { %s2887_s16 = smov 0  }
  0x12 LB: > { %3950 = sst [smem:[#allocation14_spill]] %s2772_s9  ;;  %s37_s17 = sadd.s32 1, %s2796_s14  ;;  %s2804_s16 = sphi %s2887_s16, %s28_s16   ;;  %s2800_s15 = sphi %s2885_s15, %s3993_s15   ;;  %s2796_s14 = sphi %s2883_s14, %s3999_s14   ;;  %s2792_s5 = sphi %s2881_s5, %s3991_s5   ;;  %s2788_s13 = sphi %s2879_s13, %s3998_s13   ;;  %s2784_s12 = sphi %s2877_s12, %s3990_s12   ;;  %s2780_s11 = sphi %s2875_s11, %s3997_s11   ;;  %s2776_s10 = sphi %s2873_s10, %s3996_s10   ;;  %s2772_s9 = sphi %s2871_s9, %s3988_s9   ;;  %s2768_s30 = sphi %s2869_s30, %s3995_s30   ;;  %s2764_s29 = sphi %s2867_s29, %s3994_s29  }
  0x13   : > { %3951 = sst [smem:[#allocation15_spill]] %s2784_s12  ;;  %p3934_p0 = scmp.eq.s32.totalorder %s2804_s16, 0 }
  0x14   : > { %3952 = sst [smem:[#allocation16_spill]] %s2792_s5  ;;  %p2924_p1 = scmp.ge.s32.totalorder %s37_s17, 2 }
  0x15   : > { %3953 = sst [smem:[#allocation17_spill]] %s2800_s15  ;;  %s73_s19 = sadd.s32 1, %s2772_s9 }
  0x16   : > { %p80_p2 = scmp.ne.s32.totalorder %s2772_s9, %s2768_s30  ;;  %s4001_s17 = smov (%p2924_p1, %s37_s17), 0 }
  0x17   : > { %3955 = sst [smem:[#allocation18_spill]] %s4001_s17  ;;  %s70_s20 = ssub.s32 %s2796_s14, %s4001_s17 }
  0x18   : > { %p82_p4 = por %p80_p2, %p3934_p0  ;;  %p3933_p5 = scmp.lt.s32.totalorder %s2804_s16, 4 }
  0x19   : > { %p71_p6 = scmp.eq.s32.totalorder %s70_s20, 0  ;;  %s305_s21 = sand.u32 1, %s2804_s16  }
  0x1a   : > { %s307_s23 = sand.u32 1, %s2772_s9   ;;  %s2248_s25 = sshll.u32 %s2796_s14, 7 }
  0x1b   : > { %s2944_s22 = scalar_select %p71_p6, %s2772_s9, %s73_s19  }
  0x1c   : > { %s2947_s24 = sshll.u32 %s307_s23, 7  ;;  %s3957_s1 = sld [smem:[#allocation22_spill]] }
  0x1d   : > { %3956 = sst [smem:[#allocation19_spill]] %s2944_s22  ;;  %s309_s17 = scalar_lea.vmem [#allocation7], %s2947_s24 }
  0x1e   : > { %s316_s8 = sshll.u32 %s309_s17, 4  ;;  %p2958_p7 = pnand %p3933_p5, %p82_p4  ;;  %s2962_s8 = int_to_ptr.vmem [resolvable:$true] %s316_s8 }
  0x1f   : > { %s2965_s20 = scalar_lea.sflag [#allocation8], %s305_s21 }
  0x20   : > { %p3936_p10 = pneg %p2958_p7 }
  0x22   : > { %s2953_s28 = scalar_lea.hbm %s3957_s1, %s2248_s25  ;;  %s2593_s26 = scalar_lea.hbm %s3957_s1, 4096 }
  0x23   : > { %s2588_s23 = scalar_lea.hbm %s2953_s28, 2048  ;;  %p2594_p13 = scmp.lt.u32.totalorder %s2953_s28, %s3957_s1 }
  0x24   : > { %p2589_p9 = scmp.ne.s32.totalorder %s2953_s28, %s2588_s23  ;;  %p2595_p2 = scmp.lt.u32.totalorder %s2593_s26, %s2588_s23 }
  0x25   : > { %p2597_p6 = scmp.lt.u32.totalorder %s2588_s23, %s2953_s28 }
  0x26   : > { %p2591_p11 = pnand %p3936_p10, %p2589_p9  ;;  %p2596_p4 = por %p2595_p2, %p2594_p13 }
  0x28   : > { %p2592_p12 = pneg %p2591_p11  ;;  %p2598_p5 = por %p2597_p6, %p2596_p4 }
  0x2a   : > { %p2599_p3 = pnand %p2598_p5, %p2592_p12 }
  0x2c   : > { %2602 = shalt.err (!%p2599_p3)
}
  0x2d   : > { %s2603_s21 = scalar_lea.vmem %s2962_s8, 2048  ;;  %s2806_s17 = smov [#allocation7]  }
  0x2e   : > { %p2604_p9 = scmp.ne.s32.totalorder %s2962_s8, %s2603_s21  ;;  %s2608_s25 = sshll.u32 %s2806_s17, 4  ;;  %s2609_s25 = int_to_ptr.vmem [resolvable:$false] %s2608_s25 }
  0x2f   : > { %s2610_s22 = scalar_lea.vmem %s2609_s25, 4096  ;;  %p2611_p8 = scmp.lt.s32.totalorder %s2962_s8, %s2609_s25 }
  0x30   : > { %p2606_p11 = pnand %p2604_p9, %p3936_p10  ;;  %p2612_p13 = scmp.lt.s32.totalorder %s2610_s22, %s2603_s21 }
  0x32   : > { %p2607_p0 = pneg %p2606_p11  ;;  %p2613_p2 = por %p2612_p13, %p2611_p8 }
  0x34   : > { %p2614_p4 = pnand %p2613_p2, %p2607_p0 }
  0x36   : > { %2617 = shalt.err (!%p2614_p4)
}
  0x37   : > { %s2807_s23 = smov 256   ;;  %s3935_s26 = smov 128  }
  0x38   : > { %s3937_s27 = smov 8   ;;  %p353_p0 = scmp.lt.s32.totalorder %s2804_s16, 5 }
  0x39   : > { %2377 = dma.hbm_to_vmem [thread:$0]  (!%p2958_p7), %s2953_s28, 2048, %s2962_s8, %s2965_s20, %s2807_s23, %s3935_s26, %s3937_s27  }
  0x3a   : > { %p3959_p3 = scmp.ge.s32.totalorder %s2804_s16, 1  ;;  %s3003_s17 = sadd.s32 4294967295, %s2804_s16  }
  0x3b   : > { %s2187_s25 = sadd.s32 4294967294, %s2804_s16   ;;  %s40_s22 = sadd.s32 1, %s2800_s15 }
  0x3c   : > { %p2998_p5 = pnand %p3959_p3, %p353_p0  ;;  %s47_s1 = sadd.s32 1, %s2784_s12 }
  0x3d   : > { %s4003_s22 = smov (!%p2924_p1, %s40_s22), %s2800_s15  ;;  %p54_p8 = scmp.ne.s32.totalorder %s2784_s12, %s2780_s11 }
  0x3e   : > { %s3960_s21 = scalar_select %p2998_p5, 1, 0 }
  0x3f   : > { %p60_p12 = scmp.ne.s32.totalorder %s2780_s11, %s2776_s10  ;;  %p42_p6 = scmp.ge.s32.totalorder %s4003_s22, 2 }
  0x40   : > { %p61_p9 = scmp.eq.s32.totalorder %s3003_s17, 0  ;;  %p3961_p11 = scmp.eq.s32.totalorder %s2804_s16, 0 }
  0x41   : > { %p246_p2 = scmp.eq.s32.totalorder %s3003_s17, 3  ;;  %s4005_s22 = smov (%p42_p6, %s4003_s22), 0 }
  0x42   : > { %p3018_p13 = por %p3961_p11, %p54_p8  ;;  %3963 = sst [smem:[#allocation20_spill]] %s4005_s22 }
  0x43   : > { %p3028_p1 = por %p61_p9, %p60_p12  ;;  %p3965_p4 = scmp.ne.s32.totalorder %s2768_s30, %s2764_s29 }
  0x44   : > { %s44_s23 = ssub.s32 %s2800_s15, %s4005_s22  ;;  %p3041_p3 = por %p246_p2, %p54_p8 }
  0x45   : > { %s3964_s18 = scalar_select %p3028_p1, 1, 0 }
  0x46   : > { %p3035_p0 = por %p3965_p4, %p61_p9  ;;  %p45_p11 = scmp.eq.s32.totalorder %s44_s23, 0 }
  0x47   : > { %s3967_s26 = scalar_select %p3041_p3, 1, 0 }
  0x48   : > { %s3966_s28 = scalar_select %p3035_p0, 1, 0 }
  0x49   : > { %p252_p10 = scmp.eq.s32.totalorder %s2187_s25, 3  ;;  %s284_s27 = sand.u32 1, %s2784_s12  }
  0x4a   : > { %s2247_s9 = sshll.u32 %s2800_s15, 12  ;;  %s2190_s29 = sshll.u32 %s284_s27, 8 }
  0x4b   : > { %s3048_s5 = scalar_select %p45_p11, %s2784_s12, %s47_s1  }
  0x4c   : > { %p3053_p6 = por %p252_p10, %p60_p12  ;;  %s3060_s22 = scalar_lea.hbm %s3922_s0, %s2247_s9 }
  0x4d   : > { %3968 = sst [smem:[#allocation21_spill]] %s3048_s5  ;;  %p3970_p8 = scmp.lt.s32.totalorder %s2804_s16, 4 }
  0x4e   : > { %s3969_s7 = scalar_select %p3053_p6, 1, 0 }
  0x4f   : > { %p3066_p9 = pnand %p3970_p8, %p3018_p13  ;;  %s288_s25 = scalar_lea.vmem [#allocation4], %s2190_s29 }
  0x50   : > { %s295_s23 = sshll.u32 %s288_s25, 4  ;;  %s3072_s15 = scalar_lea.sflag [#allocation5], %s284_s27  ;;  %s3070_s23 = int_to_ptr.vmem [resolvable:$true] %s295_s23 }
  0x51   : > { %s2618_s4 = scalar_lea.hbm %s3060_s22, 4096  ;;  %p2620_p12 = pneg %p3066_p9 }
  0x52   : > { %p2619_p10 = scmp.ne.s32.totalorder %s3060_s22, %s2618_s4  ;;  %s2623_s8 = scalar_lea.hbm %s3922_s0, 8192 }
  0x53   : > { %p2624_p13 = scmp.lt.u32.totalorder %s3060_s22, %s3922_s0  ;;  %p2625_p11 = scmp.lt.u32.totalorder %s2623_s8, %s2618_s4 }
  0x54   : > { %p2621_p2 = pnand %p2620_p12, %p2619_p10  ;;  %p2627_p6 = scmp.lt.u32.totalorder %s2618_s4, %s3060_s22 }
  0x55   : > { %p2626_p8 = por %p2625_p11, %p2624_p13 }
  0x56   : > { %p2622_p4 = pneg %p2621_p2 }
  0x57   : > { %p2628_p3 = por %p2627_p6, %p2626_p8 }
  0x59   : > { %p2629_p0 = pnand %p2628_p3, %p2622_p4 }
  0x5b   : > { %2632 = shalt.err (!%p2629_p0)
}
  0x5c   : > { %s2633_s27 = scalar_lea.vmem %s3070_s23, 4096  ;;  %s2810_s29 = smov [#allocation4]  }
  0x5d   : > { %p2634_p10 = scmp.ne.s32.totalorder %s3070_s23, %s2633_s27  ;;  %s2638_s25 = sshll.u32 %s2810_s29, 4  ;;  %s2639_s25 = int_to_ptr.vmem [resolvable:$false] %s2638_s25 }
  0x5e   : > { %s2640_s12 = scalar_lea.vmem %s2639_s25, 8192  ;;  %p2641_p5 = scmp.lt.s32.totalorder %s3070_s23, %s2639_s25 }
  0x5f   : > { %p2636_p2 = pnand %p2634_p10, %p2620_p12  ;;  %p2642_p13 = scmp.lt.s32.totalorder %s2640_s12, %s2633_s27 }
  0x61   : > { %p2637_p1 = pneg %p2636_p2  ;;  %p2643_p11 = por %p2642_p13, %p2641_p5 }
  0x63   : > { %p2644_p6 = pnand %p2643_p11, %p2637_p1 }
  0x65   : > { %2647 = shalt.err (!%p2644_p6)
}
  0x66   : > { %s3972_s5 = smov 8   ;;  %s3973_s4 = smov 128  }
  0x67   : > { %2374 = dma.hbm_to_vmem [thread:$0]  (!%p3066_p9), %s3060_s22, 4096, %s3070_s23, %s3072_s15, %s3973_s4, %s3973_s4, %s3972_s5  }
  0x68   : > { %s2249_s6 = sshll.u32 %s2796_s14, 11  ;;  %s338_s9 = scalar_lea.vmem [#allocation9], %s2947_s24 }
  0x69   : > { %s345_s8 = sshll.u32 %s338_s9, 4  ;;  %s3108_s25 = scalar_lea.hbm %s3925_s3, %s2249_s6  ;;  %s3110_s8 = int_to_ptr.vmem [resolvable:$true] %s345_s8 }
  0x6a   : > { %s2648_s1 = scalar_lea.hbm %s3108_s25, 2048  ;;  %p3974_p1 = pneg %p2958_p7 }
  0x6b   : > { %p2649_p5 = scmp.ne.s32.totalorder %s3108_s25, %s2648_s1  ;;  %s2653_s22 = scalar_lea.hbm %s3925_s3, 4096 }
  0x6c   : > { %p2654_p9 = scmp.lt.u32.totalorder %s3108_s25, %s3925_s3  ;;  %p2655_p12 = scmp.lt.u32.totalorder %s2653_s22, %s2648_s1 }
  0x6d   : > { %p2651_p0 = pnand %p2649_p5, %p3974_p1  ;;  %p2657_p8 = scmp.lt.u32.totalorder %s2648_s1, %s3108_s25 }
  0x6e   : > { %p2656_p4 = por %p2655_p12, %p2654_p9 }
  0x6f   : > { %p2652_p3 = pneg %p2651_p0 }
  0x70   : > { %p2658_p10 = por %p2657_p8, %p2656_p4 }
  0x72   : > { %p2659_p2 = pnand %p2658_p10, %p2652_p3 }
  0x74   : > { %2662 = shalt.err (!%p2659_p2)
}
  0x75   : > { %s2663_s5 = scalar_lea.vmem %s3110_s8, 2048  ;;  %p3975_p11 = pmov %p3974_p1 }
  0x76   : > { %p2664_p13 = scmp.ne.s32.totalorder %s3110_s8, %s2663_s5  ;;  %s2811_s4 = smov [#allocation9]  }
  0x77   : > { %s2668_s6 = sshll.u32 %s2811_s4, 4  ;;  %s2669_s6 = int_to_ptr.vmem [resolvable:$false] %s2668_s6 }
  0x78   : > { %p2666_p6 = pnand %p2664_p13, %p3975_p11  ;;  %s2670_s9 = scalar_lea.vmem %s2669_s6, 4096 }
  0x79   : > { %p2671_p1 = scmp.lt.s32.totalorder %s3110_s8, %s2669_s6  ;;  %p2672_p0 = scmp.lt.s32.totalorder %s2670_s9, %s2663_s5 }
  0x7a   : > { %p2667_p5 = pneg %p2666_p6 }
  0x7b   : > { %p2673_p9 = por %p2672_p0, %p2671_p1 }
  0x7d   : > { %p2674_p12 = pnand %p2673_p9, %p2667_p5 }
  0x7f   : > { %2677 = shalt.err (!%p2674_p12)
}
  0x80   : > { %s2812_s29 = smov 64   ;;  %s2813_s27 = smov 4  }
  0x81   : > { %2380 = dma.hbm_to_vmem [thread:$0]  (!%p2958_p7), %s3108_s25, 2048, %s3110_s8, %s2965_s20, %s2812_s29, %s2812_s29, %s2813_s27  }
  0x82   : > { %p3976_p3 = scmp.ne.s32.totalorder %s3960_s21, 0 }
  0x83   : > { %s3139_s1 = sand.u32 (!%p3976_p3), 1, %s2780_s11   ;;  %p3977_p4 = scmp.ne.s32.totalorder (!%p3976_p3), %s3964_s18, 0 }
  0x84   : > { %357 = sbr.rel (%p3976_p3) target bundleno = 1137 (0x471), region = 52  ;;  %s2200_s15 = sshll.u32 (!%p3976_p3), %s3139_s1, 8 }
  0x85   : > { %s360_s24 = scalar_lea.sflag (!%p3976_p3), [#allocation5], %s3139_s1  ;;  %s3143_s22 = scalar_lea.vmem (!%p3976_p3), [#allocation4], %s2200_s15 }
  0x8b   : > { %2751 = dma.done.wait (%p3977_p4), %s360_s24, 4096  }
  0x8c   : > { %2753 = vsyncadd (%p3977_p4), %s360_s24, 4294963200  ;;  %s368_s19 = sand.u32 1, %s3003_s17   ;;  %s370_s20 = sand.u32 1, %s2768_s30  }
  0x8d   : > { %s2201_s21 = sshll.u32 %s370_s20, 7  ;;  %s369_s8 = scalar_lea.sflag [#allocation8], %s368_s19 }
  0x8e   : > { %s3151_s25 = scalar_lea.vmem [#allocation7], %s2201_s21  ;;  %p3978_p7 = scmp.ne.s32.totalorder %s3966_s28, 0 }
  0x90   : > { %2755 = dma.done.wait (%p3978_p7), %s369_s8, 4096  }
  0x91   : > { %2757 = vsyncadd (%p3978_p7), %s369_s8, 4294963200  ;;  %s2204_s23 = sshll.u32 %s2788_s13, 1  ;;  %s3164_s5 = scalar_lea.vmem [#allocation9], %s2201_s21 }
  0x92   : > { %p431_p8 = scmp.lt.s32.totalorder %s2204_s23, 3  ;;  %s3166_s4 = scalar_lea.vmem [#allocation10], %s2200_s15 }
  0x93   : > { %p2205_p10 = scmp.ne.s32.totalorder %s2788_s13, 0 }
  0x94   : > { %s4007_s23 = smov (!%p431_p8, %s2204_s23), 3  ;;  %v2814_v0 = vmov (!%p2205_p10), 0.0  }
  0x95   : > { %s433_s17 = scalar_lea.vmem %s3924_s2, %s4007_s23  ;;  %441 = sbr.rel (%p2205_p10) target bundleno = 165 (0xa5), region = 68  ;;  %442 = vst [vmem:[#allocation2] sm:$0xff] (!%p2205_p10), %v2814_v0  ;;  %443 = vst [vmem:[#allocation2 + $0x8] sm:$0xff] (!%p2205_p10), %v2814_v0 }
  0x96   : > { %444 = vst [vmem:[#allocation2 + $0x10] sm:$0xff] (!%p2205_p10), %v2814_v0  ;;  %445 = vst [vmem:[#allocation2 + $0x18] sm:$0xff] (!%p2205_p10), %v2814_v0 }
  0x97   : > { %446 = vst [vmem:[#allocation2 + $0x20] sm:$0xff] (!%p2205_p10), %v2814_v0  ;;  %447 = vst [vmem:[#allocation2 + $0x28] sm:$0xff] (!%p2205_p10), %v2814_v0 }
  0x98   : > { %448 = vst [vmem:[#allocation2 + $0x30] sm:$0xff] (!%p2205_p10), %v2814_v0  ;;  %449 = vst [vmem:[#allocation2 + $0x38] sm:$0xff] (!%p2205_p10), %v2814_v0 }
  0x99   : > { %450 = vst [vmem:[#allocation2 + $0x40] sm:$0xff] (!%p2205_p10), %v2814_v0  ;;  %451 = vst [vmem:[#allocation2 + $0x48] sm:$0xff] (!%p2205_p10), %v2814_v0 }
  0x9a   : > { %452 = vst [vmem:[#allocation2 + $0x50] sm:$0xff] (!%p2205_p10), %v2814_v0  ;;  %453 = vst [vmem:[#allocation2 + $0x58] sm:$0xff] (!%p2205_p10), %v2814_v0 }
  0x9b   : > { %454 = vst [vmem:[#allocation2 + $0x60] sm:$0xff] (!%p2205_p10), %v2814_v0  ;;  %455 = vst [vmem:[#allocation2 + $0x68] sm:$0xff] (!%p2205_p10), %v2814_v0 }
  0x9c   : > { %456 = vst [vmem:[#allocation2 + $0x70] sm:$0xff] %v2814_v0  ;;  %457 = vst [vmem:[#allocation2 + $0x78] sm:$0xff] %v2814_v0 }
  0x9d   : > { %458 = vst [vmem:[#allocation2 + $0x80] sm:$0xff] %v2814_v0  ;;  %459 = vst [vmem:[#allocation2 + $0x88] sm:$0xff] %v2814_v0 }
  0x9e   : > { %460 = vst [vmem:[#allocation2 + $0x90] sm:$0xff] %v2814_v0  ;;  %461 = vst [vmem:[#allocation2 + $0x98] sm:$0xff] %v2814_v0 }
  0x9f   : > { %462 = vst [vmem:[#allocation2 + $0xa0] sm:$0xff] %v2814_v0  ;;  %463 = vst [vmem:[#allocation2 + $0xa8] sm:$0xff] %v2814_v0 }
  0xa0   : > { %464 = vst [vmem:[#allocation2 + $0xb0] sm:$0xff] %v2814_v0  ;;  %465 = vst [vmem:[#allocation2 + $0xb8] sm:$0xff] %v2814_v0 }
  0xa1   : > { %466 = vst [vmem:[#allocation2 + $0xc0] sm:$0xff] %v2814_v0  ;;  %467 = vst [vmem:[#allocation2 + $0xc8] sm:$0xff] %v2814_v0 }
  0xa2   : > { %468 = vst [vmem:[#allocation2 + $0xd0] sm:$0xff] %v2814_v0  ;;  %469 = vst [vmem:[#allocation2 + $0xd8] sm:$0xff] %v2814_v0 }
  0xa3   : > { %470 = vst [vmem:[#allocation2 + $0xe0] sm:$0xff] %v2814_v0  ;;  %471 = vst [vmem:[#allocation2 + $0xe8] sm:$0xff] %v2814_v0 }
  0xa4   : > { %472 = vst [vmem:[#allocation2 + $0xf0] sm:$0xff] %v2814_v0  ;;  %473 = vst [vmem:[#allocation2 + $0xf8] sm:$0xff] %v2814_v0 }
  0xa5 PF: > { %v2484_v1 = vld [vmem:[%s3151_s25 + $0x4] ss:$8 sps:$4 sm:$0xff]   ;;  %v2486_v2 = vld [vmem:[%s3151_s25] ss:$8 sps:$4 sm:$0xff]   ;;  %v2815_v3 = vmov 0   ;;  %v2512_v25 = vld [vmem:[%s3164_s5 + $0x50] sm:$0xff]  }
  0xa6   : > { %662 = vmatprep.mubr.bf16.mxu0 %v2815_v3  ;;  %630 = vmatprep.subr.bf16.mxu0 %v2484_v1  ;;  %v2487_v4 = vld [vmem:[%s3151_s25 + $0x14] ss:$8 sps:$4 sm:$0xff]   ;;  %v2489_v5 = vld [vmem:[%s3151_s25 + $0x10] ss:$8 sps:$4 sm:$0xff]   ;;  %v2490_v6 = vld [vmem:[%s3151_s25 + $0x24] ss:$8 sps:$4 sm:$0xff]  }
  0xa7   : > { %631 = vmatpush1.bf16.msra.mxu0 %v2486_v2  ;;  %v2492_v7 = vld [vmem:[%s3151_s25 + $0x20] ss:$8 sps:$4 sm:$0xff]   ;;  %v2493_v8 = vld [vmem:[%s3151_s25 + $0x34] ss:$8 sps:$4 sm:$0xff]   ;;  %v2495_v9 = vld [vmem:[%s3151_s25 + $0x30] ss:$8 sps:$4 sm:$0xff]  }
  0xa8   : > { %632 = vmatprep.subr.bf16.mxu0 %v2487_v4  ;;  %v2496_v10 = vld [vmem:[%s3151_s25 + $0x44] ss:$8 sps:$4 sm:$0xff]   ;;  %v2498_v11 = vld [vmem:[%s3151_s25 + $0x40] ss:$8 sps:$4 sm:$0xff]   ;;  %v2499_v12 = vld [vmem:[%s3151_s25 + $0x54] ss:$8 sps:$4 sm:$0xff]  }
  0xa9   : > { %v2501_v13 = vld [vmem:[%s3151_s25 + $0x50] ss:$8 sps:$4 sm:$0xff]   ;;  %v2502_v14 = vld [vmem:[%s3151_s25 + $0x64] ss:$8 sps:$4 sm:$0xff]   ;;  %v2504_v15 = vld [vmem:[%s3151_s25 + $0x60] ss:$8 sps:$4 sm:$0xff]  }
  0xaa   : > { %v2505_v16 = vld [vmem:[%s3151_s25 + $0x74] ss:$8 sps:$4 sm:$0xff]   ;;  %v2508_v17 = vld [vmem:[%s3164_s5 + $0x40] sm:$0xff]   ;;  %v2510_v19 = vld [vmem:[%s3164_s5 + $0x48] sm:$0xff]   ;;  %s823_s28 = sld [smem:[#allocation3]]  ;;  %p2238_p2 = scmp.ne.s32.totalorder %s2788_s13, 1 }
  0xab   : > { %633 = vmatpush1.bf16.msra.mxu0 %v2489_v5  ;;  %v2509_v18 = vld [vmem:[%s3164_s5] sm:$0xff]   ;;  %v2507_v20 = vld [vmem:[%s3151_s25 + $0x70] ss:$8 sps:$4 sm:$0xff]   ;;  %v475_v22 = vld [vmem:[%s3143_s22 + $0x8] sm:$0xff]  ;;  %2251 = vmatprep.subr.bf16.mxu1 %v2508_v17  ;;  %s3979_s15 = sld [smem:[#allocation23_spill]] (!%p2238_p2)  ;;  %s3981_s21 = sld [smem:[#allocation25_spill]] (!%p2238_p2) }
  0xac   : > { %634 = vmatprep.subr.bf16.mxu0 %v2490_v6  ;;  %v474_v21 = vld [vmem:[%s3143_s22] sm:$0xff]  ;;  %2252 = vmatpush3.bf16.msra.mxu1 %v2509_v18  ;;  %v2511_v23 = vld [vmem:[%s3164_s5 + $0x8] sm:$0xff]   ;;  %v2513_v26 = vld [vmem:[%s3164_s5 + $0x10] sm:$0xff]  }
  0xad   : > { %v506_v24 = vpack.c.bf16 %v475_v22, %v474_v21  ;;  %2253 = vmatprep.subr.bf16.mxu1 %v2510_v19  ;;  %v2514_v27 = vld [vmem:[%s3164_s5 + $0x58] sm:$0xff]   ;;  %v476_v28 = vld [vmem:[%s3143_s22 + $0x10] sm:$0xff]  ;;  %v2516_v32 = vld [vmem:[%s3164_s5 + $0x60] sm:$0xff]   ;;  %v540_v19 = vlaneseq }
  0xae   : > { %v477_v29 = vld [vmem:[%s3143_s22 + $0x18] sm:$0xff]  ;;  %v2517_v33 = vld [vmem:[%s3164_s5 + $0x20] sm:$0xff]   ;;  %v479_v35 = vld [vmem:[%s3143_s22 + $0x28] sm:$0xff] }
  0xaf   : > { %635 = vmatpush1.bf16.msra.mxu0 %v2492_v7  ;;  %v2515_v30 = vld [vmem:[%s3164_s5 + $0x18] sm:$0xff]   ;;  %v507_v31 = vpack.c.bf16 %v477_v29, %v476_v28  ;;  %v478_v34 = vld [vmem:[%s3143_s22 + $0x20] sm:$0xff]  ;;  %v480_v37 = vld [vmem:[%s3143_s22 + $0x30] sm:$0xff] }
  0xb0   : > { %636 = vmatprep.subr.bf16.mxu0 %v2493_v8  ;;  %2254 = vmatpush3.bf16.msra.mxu1 %v2511_v23  ;;  %v508_v36 = vpack.c.bf16 %v479_v35, %v478_v34  ;;  %v481_v38 = vld [vmem:[%s3143_s22 + $0x38] sm:$0xff]  ;;  %v482_v40 = vld [vmem:[%s3143_s22 + $0x40] sm:$0xff]  ;;  %v483_v41 = vld [vmem:[%s3143_s22 + $0x48] sm:$0xff] }
  0xb1   : > { %2255 = vmatprep.subr.bf16.mxu1 %v2512_v25  ;;  %v509_v39 = vpack.c.bf16 %v481_v38, %v480_v37  ;;  %v510_v42 = vpack.c.bf16 %v483_v41, %v482_v40  ;;  %v484_v43 = vld [vmem:[%s3143_s22 + $0x50] sm:$0xff]  ;;  %v485_v44 = vld [vmem:[%s3143_s22 + $0x58] sm:$0xff]  ;;  %v486_v46 = vld [vmem:[%s3143_s22 + $0x60] sm:$0xff] }
  0xb2   : > { %v511_v45 = vpack.c.bf16 %v485_v44, %v484_v43  ;;  %v487_v47 = vld [vmem:[%s3143_s22 + $0x68] sm:$0xff]  ;;  %v488_v49 = vld [vmem:[%s3143_s22 + $0x70] sm:$0xff]  ;;  %v489_v50 = vld [vmem:[%s3143_s22 + $0x78] sm:$0xff] }
  0xb3   : > { %637 = vmatpush1.bf16.msra.mxu0 %v2495_v9  ;;  %v512_v48 = vpack.c.bf16 %v487_v47, %v486_v46  ;;  %v513_v51 = vpack.c.bf16 %v489_v50, %v488_v49  ;;  %v490_v52 = vld [vmem:[%s3143_s22 + $0x80] sm:$0xff]  ;;  %v491_v53 = vld [vmem:[%s3143_s22 + $0x88] sm:$0xff]  ;;  %v492_v55 = vld [vmem:[%s3143_s22 + $0x90] sm:$0xff] }
  0xb4   : > { %638 = vmatprep.subr.bf16.mxu0 %v2496_v10  ;;  %2256 = vmatpush3.bf16.msra.mxu1 %v2513_v26  ;;  %v514_v54 = vpack.c.bf16 %v491_v53, %v490_v52  ;;  %v493_v56 = vld [vmem:[%s3143_s22 + $0x98] sm:$0xff]  ;;  %v494_v58 = vld [vmem:[%s3143_s22 + $0xa0] sm:$0xff]  ;;  %v495_v59 = vld [vmem:[%s3143_s22 + $0xa8] sm:$0xff] }
  0xb5   : > { %2257 = vmatprep.subr.bf16.mxu1 %v2514_v27  ;;  %v515_v57 = vpack.c.bf16 %v493_v56, %v492_v55  ;;  %v516_v60 = vpack.c.bf16 %v495_v59, %v494_v58  ;;  %v496_v61 = vld [vmem:[%s3143_s22 + $0xb0] sm:$0xff]  ;;  %v497_v62 = vld [vmem:[%s3143_s22 + $0xb8] sm:$0xff]  ;;  %v2518_v63 = vld [vmem:[%s3164_s5 + $0x68] sm:$0xff]  }
  0xb6   : > { %v2519_v0 = vld [vmem:[%s3164_s5 + $0x28] sm:$0xff]   ;;  %v517_v1 = vpack.c.bf16 %v497_v62, %v496_v61  ;;  %v2520_v2 = vld [vmem:[%s3164_s5 + $0x70] sm:$0xff]   ;;  %v498_v5 = vld [vmem:[%s3143_s22 + $0xc0] sm:$0xff] }
  0xb7   : > { %639 = vmatpush1.bf16.msra.mxu0 %v2498_v11  ;;  %v2521_v4 = vld [vmem:[%s3164_s5 + $0x30] sm:$0xff]   ;;  %v499_v6 = vld [vmem:[%s3143_s22 + $0xc8] sm:$0xff]  ;;  %v2522_v7 = vld [vmem:[%s3164_s5 + $0x78] sm:$0xff]  }
  0xb8   : > { %640 = vmatprep.subr.bf16.mxu0 %v2499_v12  ;;  %2258 = vmatpush3.bf16.msra.mxu1 %v2515_v30  ;;  %v2523_v8 = vld [vmem:[%s3164_s5 + $0x38] sm:$0xff]   ;;  %v518_v9 = vpack.c.bf16 %v499_v6, %v498_v5  ;;  %v500_v10 = vld [vmem:[%s3143_s22 + $0xd0] sm:$0xff]  ;;  %v538_v22 = vld [vmem:[%s433_s17] sm:$0x3] }
  0xb9   : > { %2259 = vmatprep.subr.bf16.mxu1 %v2516_v32  ;;  %v501_v11 = vld [vmem:[%s3143_s22 + $0xd8] sm:$0xff] }
  0xba   : > { %v519_v12 = vpack.c.bf16 %v501_v11, %v500_v10  ;;  %v505_v17 = vld [vmem:[%s3143_s22 + $0xf8] sm:$0xff] }
  0xbb   : > { %641 = vmatpush1.bf16.msra.mxu0 %v2501_v13  ;;  %v502_v13 = vld [vmem:[%s3143_s22 + $0xe0] sm:$0xff] }
  0xbc   : > { %642 = vmatprep.subr.bf16.mxu0 %v2502_v14  ;;  %2260 = vmatpush3.bf16.msra.mxu1 %v2517_v33  ;;  %v503_v14 = vld [vmem:[%s3143_s22 + $0xe8] sm:$0xff] }
  0xbd   : > { %2261 = vmatprep.subr.bf16.mxu1 %v2518_v63 }
  0xbf   : > { %643 = vmatpush1.bf16.msra.mxu0 %v2504_v15  ;;  %v520_v15 = vpack.c.bf16 %v503_v14, %v502_v13 }
  0xc0   : > { %644 = vmatprep.subr.bf16.mxu0 %v2505_v16  ;;  %2262 = vmatpush3.bf16.msra.mxu1 %v2519_v0  ;;  %v504_v16 = vld [vmem:[%s3143_s22 + $0xf0] sm:$0xff] }
  0xc1   : > { %2263 = vmatprep.subr.bf16.mxu1 %v2520_v2  ;;  %v521_v18 = vpack.c.bf16 %v505_v17, %v504_v16 }
  0xc3   : > { %645 = vmatpush1.bf16.msra.mxu0 %v2507_v20  ;;  %v541_v20 = vshrl.u32 %v540_v19, 7 }
  0xc4   : > { %2264 = vmatpush3.bf16.msra.mxu1 %v2521_v4 }
  0xc5   : > { %2265 = vmatprep.subr.bf16.mxu1 %v2522_v7  ;;  %v542_v21 = vsub.s32 0, %v541_v20  ;;  %v546_v23 = vsub.s32 1, %v541_v20 }
  0xc6   : > { %663 = vmatmul.mubr.bf16.vlgmr.msra.gmra.mrb[0].mxu0 %v506_v24 }
  0xc7   : > { %672 = vmatprep.mubr.bf16.mxu0 %v2815_v3  ;;  %v3254_v24 = vrot.slane %v538_v22, %v542_v21  ;;  %v3256_v25 = vrot.slane %v538_v22, %v546_v23 }
  0xc8   : > { %2266 = vmatpush3.bf16.msra.mxu1 %v2523_v8 }
  0xce   : > { %673 = vmatmul.mubr.bf16.gmra.mrb[4].mxu0 %v507_v31 }
  0xcf   : > { %682 = vmatprep.mubr.bf16.mxu0 %v2815_v3 }
  0xd6   : > { %683 = vmatmul.mubr.bf16.gmra.mrb[8].mxu0 %v508_v36 }
  0xd7   : > { %692 = vmatprep.mubr.bf16.mxu0 %v2815_v3 }
  0xde   : > { %693 = vmatmul.mubr.bf16.gmra.mrb[12].mxu0 %v509_v39 }
  0xdf   : > { %702 = vmatprep.mubr.bf16.mxu0 %v2815_v3 }
  0xe6   : > { %703 = vmatmul.mubr.bf16.gmra.mrb[16].mxu0 %v510_v42 }
  0xe7   : > { %712 = vmatprep.mubr.bf16.mxu0 %v2815_v3 }
  0xee   : > { %713 = vmatmul.mubr.bf16.gmra.mrb[20].mxu0 %v511_v45 }
  0xef   : > { %722 = vmatprep.mubr.bf16.mxu0 %v2815_v3 }
  0xf6   : > { %723 = vmatmul.mubr.bf16.gmra.mrb[24].mxu0 %v512_v48 }
  0xf7   : > { %732 = vmatprep.mubr.bf16.mxu0 %v2815_v3 }
  0xfe   : > { %733 = vmatmul.mubr.bf16.gmra.mrb[28].mxu0 %v513_v51 }
  0xff   : > { %742 = vmatprep.mubr.bf16.mxu0 %v2815_v3 }
 0x106   : > { %743 = vmatmul.mubr.bf16.gmra.mrb[32].mxu0 %v514_v54 }
 0x107   : > { %752 = vmatprep.mubr.bf16.mxu0 %v2815_v3 }
 0x10e   : > { %753 = vmatmul.mubr.bf16.gmra.mrb[36].mxu0 %v515_v57 }
 0x10f   : > { %762 = vmatprep.mubr.bf16.mxu0 %v2815_v3 }
 0x116   : > { %763 = vmatmul.mubr.bf16.gmra.mrb[40].mxu0 %v516_v60 }
 0x117   : > { %772 = vmatprep.mubr.bf16.mxu0 %v2815_v3 }
 0x11e   : > { %773 = vmatmul.mubr.bf16.gmra.mrb[44].mxu0 %v517_v1 }
 0x11f   : > { %782 = vmatprep.mubr.bf16.mxu0 %v2815_v3 }
 0x126   : > { %783 = vmatmul.mubr.bf16.gmra.mrb[48].mxu0 %v518_v9 }
 0x127   : > { %792 = vmatprep.mubr.bf16.mxu0 %v2815_v3 }
 0x12e   : > { %793 = vmatmul.mubr.bf16.gmra.mrb[52].mxu0 %v519_v12 }
 0x12f   : > { %802 = vmatprep.mubr.bf16.mxu0 %v2815_v3 }
 0x136   : > { %803 = vmatmul.mubr.bf16.gmra.mrb[56].mxu0 %v520_v15 }
 0x137   : > { %812 = vmatprep.mubr.bf16.mxu0 %v2815_v3  ;;  %v3258_v3 = vstv %s823_s28 }
 0x13e   : > { %813 = vmatmul.mubr.bf16.gmra.mrb[60].mxu0 %v521_v18 }
 0x199   : > { %v664_v26 = vpop.f32.mrb[0].mxu0 }
 0x19a   : > { %v665_v27 = vadd.f32 %v664_v26, %v3254_v24  ;;  %v666_v28 = vpop.f32.mrb[1].mxu0 }
 0x19b   : > { %v667_v29 = vadd.f32 %v666_v28, %v3256_v25  ;;  %v668_v30 = vpop.f32.mrb[2].mxu0 }
 0x19c   : > { %v889_v31 = vmul.f32 %v3258_v3, %v665_v27  ;;  %v669_v32 = vadd.f32 %v668_v30, %v3254_v24  ;;  %v670_v33 = vpop.f32.mrb[3].mxu0  ;;  %vm824_vm0 = vcmp.ge.f32.partialorder %v665_v27, 0.0 }
 0x19d   : > { %v890_v34 = vmul.f32 %v3258_v3, %v667_v29  ;;  %v671_v35 = vadd.f32 %v670_v33, %v3256_v25  ;;  %vm825_vm2 = vcmp.ge.f32.partialorder %v667_v29, 0.0 }
 0x19e   : > { %vm826_vm1 = vcmp.ge.f32.partialorder %v669_v32, 0.0  ;;  %v891_v36 = vmul.f32 %v3258_v3, %v669_v32  ;;  %v953_v38 = vsel %vm824_vm0, %v665_v27, %v889_v31 }
 0x19f   : > { %v892_v37 = vmul.f32 %v3258_v3, %v671_v35  ;;  %vm827_vm3 = vcmp.ge.f32.partialorder %v671_v35, 0.0  ;;  %v954_v41 = vsel %vm825_vm2, %v667_v29, %v890_v34 }
 0x1a0   : > { %v955_v39 = vsel %vm826_vm1, %v669_v32, %v891_v36 }
 0x1a1   : > { %v674_v40 = vpop.f32.mrb[4].mxu0  ;;  %v956_v42 = vsel %vm827_vm3, %v671_v35, %v892_v37  ;;  %v1049_v43 = vpack.c.bf16 %v955_v39, %v953_v38 }
 0x1a2   : > { %v675_v44 = vadd.f32 %v674_v40, %v3254_v24  ;;  %v676_v45 = vpop.f32.mrb[5].mxu0  ;;  %v1050_v46 = vpack.c.bf16 %v956_v42, %v954_v41 }
 0x1a3   : > { %v677_v47 = vadd.f32 %v676_v45, %v3256_v25  ;;  %v678_v48 = vpop.f32.mrb[6].mxu0 }
 0x1a4   : > { %v893_v49 = vmul.f32 %v3258_v3, %v675_v44  ;;  %v679_v50 = vadd.f32 %v678_v48, %v3254_v24  ;;  %v680_v51 = vpop.f32.mrb[7].mxu0  ;;  %1241 = vmatprep.mubr.bf16.mxu1 %v1050_v46  ;;  %vm828_vm4 = vcmp.ge.f32.partialorder %v675_v44, 0.0 }
 0x1a5   : > { %v894_v52 = vmul.f32 %v3258_v3, %v677_v47  ;;  %v681_v53 = vadd.f32 %v680_v51, %v3256_v25  ;;  %1242 = vmatmul.mubr.bf16.vlgmr.msra.gmra.mrb[0].mxu1 %v1049_v43  ;;  %vm829_vm5 = vcmp.ge.f32.partialorder %v677_v47, 0.0 }
 0x1a6   : > { %vm830_vm6 = vcmp.ge.f32.partialorder %v679_v50, 0.0  ;;  %v895_v54 = vmul.f32 %v3258_v3, %v679_v50  ;;  %v957_v56 = vsel %vm828_vm4, %v675_v44, %v893_v49 }
 0x1a7   : > { %vm831_vm7 = vcmp.ge.f32.partialorder %v681_v53, 0.0  ;;  %v896_v55 = vmul.f32 %v3258_v3, %v681_v53  ;;  %v958_v59 = vsel %vm829_vm5, %v677_v47, %v894_v52 }
 0x1a8   : > { %v959_v57 = vsel %vm830_vm6, %v679_v50, %v895_v54 }
 0x1a9   : > { %v684_v58 = vpop.f32.mrb[8].mxu0  ;;  %v960_v60 = vsel %vm831_vm7, %v681_v53, %v896_v55  ;;  %v1051_v61 = vpack.c.bf16 %v959_v57, %v957_v56 }
 0x1aa   : > { %v685_v62 = vadd.f32 %v684_v58, %v3254_v24  ;;  %v686_v63 = vpop.f32.mrb[9].mxu0  ;;  %v1052_v0 = vpack.c.bf16 %v960_v60, %v958_v59 }
 0x1ab   : > { %v687_v1 = vadd.f32 %v686_v63, %v3256_v25  ;;  %v688_v2 = vpop.f32.mrb[10].mxu0 }
 0x1ac   : > { %v897_v4 = vmul.f32 %v3258_v3, %v685_v62  ;;  %v689_v5 = vadd.f32 %v688_v2, %v3254_v24  ;;  %v690_v6 = vpop.f32.mrb[11].mxu0  ;;  %1249 = vmatprep.mubr.bf16.mxu1 %v1052_v0  ;;  %vm832_vm8 = vcmp.ge.f32.partialorder %v685_v62, 0.0 }
 0x1ad   : > { %v898_v7 = vmul.f32 %v3258_v3, %v687_v1  ;;  %v691_v8 = vadd.f32 %v690_v6, %v3256_v25  ;;  %1250 = vmatmul.mubr.bf16.gmra.mrb[4].mxu1 %v1051_v61  ;;  %vm833_vm9 = vcmp.ge.f32.partialorder %v687_v1, 0.0 }
 0x1ae   : > { %vm834_vm10 = vcmp.ge.f32.partialorder %v689_v5, 0.0  ;;  %v899_v9 = vmul.f32 %v3258_v3, %v689_v5  ;;  %v961_v11 = vsel %vm832_vm8, %v685_v62, %v897_v4 }
 0x1af   : > { %vm835_vm11 = vcmp.ge.f32.partialorder %v691_v8, 0.0  ;;  %v900_v10 = vmul.f32 %v3258_v3, %v691_v8  ;;  %v962_v14 = vsel %vm833_vm9, %v687_v1, %v898_v7 }
 0x1b0   : > { %v963_v12 = vsel %vm834_vm10, %v689_v5, %v899_v9 }
 0x1b1   : > { %v694_v13 = vpop.f32.mrb[12].mxu0  ;;  %v964_v15 = vsel %vm835_vm11, %v691_v8, %v900_v10  ;;  %v1053_v16 = vpack.c.bf16 %v963_v12, %v961_v11 }
 0x1b2   : > { %v695_v17 = vadd.f32 %v694_v13, %v3254_v24  ;;  %v696_v18 = vpop.f32.mrb[13].mxu0  ;;  %v1054_v19 = vpack.c.bf16 %v964_v15, %v962_v14 }
 0x1b3   : > { %v697_v20 = vadd.f32 %v696_v18, %v3256_v25  ;;  %v698_v21 = vpop.f32.mrb[14].mxu0 }
 0x1b4   : > { %v901_v22 = vmul.f32 %v3258_v3, %v695_v17  ;;  %v699_v23 = vadd.f32 %v698_v21, %v3254_v24  ;;  %v700_v26 = vpop.f32.mrb[15].mxu0  ;;  %1257 = vmatprep.mubr.bf16.mxu1 %v1054_v19  ;;  %vm836_vm12 = vcmp.ge.f32.partialorder %v695_v17, 0.0 }
 0x1b5   : > { %v902_v27 = vmul.f32 %v3258_v3, %v697_v20  ;;  %v701_v28 = vadd.f32 %v700_v26, %v3256_v25  ;;  %1258 = vmatmul.mubr.bf16.gmra.mrb[8].mxu1 %v1053_v16  ;;  %vm837_vm13 = vcmp.ge.f32.partialorder %v697_v20, 0.0 }
 0x1b6   : > { %vm838_vm14 = vcmp.ge.f32.partialorder %v699_v23, 0.0  ;;  %v903_v29 = vmul.f32 %v3258_v3, %v699_v23  ;;  %v965_v31 = vsel %vm836_vm12, %v695_v17, %v901_v22 }
 0x1b7   : > { %vm839_vm15 = vcmp.ge.f32.partialorder %v701_v28, 0.0  ;;  %v904_v30 = vmul.f32 %v3258_v3, %v701_v28  ;;  %v966_v34 = vsel %vm837_vm13, %v697_v20, %v902_v27 }
 0x1b8   : > { %v967_v32 = vsel %vm838_vm14, %v699_v23, %v903_v29 }
 0x1b9   : > { %v704_v33 = vpop.f32.mrb[16].mxu0  ;;  %v968_v35 = vsel %vm839_vm15, %v701_v28, %v904_v30  ;;  %v1055_v36 = vpack.c.bf16 %v967_v32, %v965_v31 }
 0x1ba   : > { %v705_v37 = vadd.f32 %v704_v33, %v3254_v24  ;;  %v706_v38 = vpop.f32.mrb[17].mxu0  ;;  %v1056_v39 = vpack.c.bf16 %v968_v35, %v966_v34 }
 0x1bb   : > { %v707_v40 = vadd.f32 %v706_v38, %v3256_v25  ;;  %v708_v41 = vpop.f32.mrb[18].mxu0 }
 0x1bc   : > { %v905_v42 = vmul.f32 %v3258_v3, %v705_v37  ;;  %v709_v43 = vadd.f32 %v708_v41, %v3254_v24  ;;  %v710_v44 = vpop.f32.mrb[19].mxu0  ;;  %1265 = vmatprep.mubr.bf16.mxu1 %v1056_v39  ;;  %vm840_vm0 = vcmp.ge.f32.partialorder %v705_v37, 0.0 }
 0x1bd   : > { %v906_v45 = vmul.f32 %v3258_v3, %v707_v40  ;;  %v711_v46 = vadd.f32 %v710_v44, %v3256_v25  ;;  %1266 = vmatmul.mubr.bf16.gmra.mrb[12].mxu1 %v1055_v36  ;;  %vm841_vm1 = vcmp.ge.f32.partialorder %v707_v40, 0.0 }
 0x1be   : > { %vm842_vm2 = vcmp.ge.f32.partialorder %v709_v43, 0.0  ;;  %v907_v47 = vmul.f32 %v3258_v3, %v709_v43  ;;  %v969_v49 = vsel %vm840_vm0, %v705_v37, %v905_v42 }
 0x1bf   : > { %vm843_vm3 = vcmp.ge.f32.partialorder %v711_v46, 0.0  ;;  %v908_v48 = vmul.f32 %v3258_v3, %v711_v46  ;;  %v970_v52 = vsel %vm841_vm1, %v707_v40, %v906_v45 }
 0x1c0   : > { %v971_v50 = vsel %vm842_vm2, %v709_v43, %v907_v47 }
 0x1c1   : > { %v714_v51 = vpop.f32.mrb[20].mxu0  ;;  %v972_v53 = vsel %vm843_vm3, %v711_v46, %v908_v48  ;;  %v1057_v54 = vpack.c.bf16 %v971_v50, %v969_v49 }
 0x1c2   : > { %v715_v55 = vadd.f32 %v714_v51, %v3254_v24  ;;  %v716_v56 = vpop.f32.mrb[21].mxu0  ;;  %v1058_v57 = vpack.c.bf16 %v972_v53, %v970_v52 }
 0x1c3   : > { %v717_v58 = vadd.f32 %v716_v56, %v3256_v25  ;;  %v718_v59 = vpop.f32.mrb[22].mxu0 }
 0x1c4   : > { %v909_v60 = vmul.f32 %v3258_v3, %v715_v55  ;;  %v719_v61 = vadd.f32 %v718_v59, %v3254_v24  ;;  %v720_v62 = vpop.f32.mrb[23].mxu0  ;;  %1273 = vmatprep.mubr.bf16.mxu1 %v1058_v57  ;;  %vm844_vm4 = vcmp.ge.f32.partialorder %v715_v55, 0.0 }
 0x1c5   : > { %v910_v63 = vmul.f32 %v3258_v3, %v717_v58  ;;  %v721_v0 = vadd.f32 %v720_v62, %v3256_v25  ;;  %1274 = vmatmul.mubr.bf16.gmra.mrb[16].mxu1 %v1057_v54  ;;  %vm845_vm5 = vcmp.ge.f32.partialorder %v717_v58, 0.0 }
 0x1c6   : > { %vm846_vm6 = vcmp.ge.f32.partialorder %v719_v61, 0.0  ;;  %v911_v1 = vmul.f32 %v3258_v3, %v719_v61  ;;  %v973_v4 = vsel %vm844_vm4, %v715_v55, %v909_v60 }
 0x1c7   : > { %vm847_vm7 = vcmp.ge.f32.partialorder %v721_v0, 0.0  ;;  %v912_v2 = vmul.f32 %v3258_v3, %v721_v0  ;;  %v974_v7 = vsel %vm845_vm5, %v717_v58, %v910_v63 }
 0x1c8   : > { %v975_v5 = vsel %vm846_vm6, %v719_v61, %v911_v1 }
 0x1c9   : > { %v724_v6 = vpop.f32.mrb[24].mxu0  ;;  %v976_v8 = vsel %vm847_vm7, %v721_v0, %v912_v2  ;;  %v1059_v9 = vpack.c.bf16 %v975_v5, %v973_v4 }
 0x1ca   : > { %v725_v10 = vadd.f32 %v724_v6, %v3254_v24  ;;  %v726_v11 = vpop.f32.mrb[25].mxu0  ;;  %v1060_v12 = vpack.c.bf16 %v976_v8, %v974_v7 }
 0x1cb   : > { %v727_v13 = vadd.f32 %v726_v11, %v3256_v25  ;;  %v728_v14 = vpop.f32.mrb[26].mxu0 }
 0x1cc   : > { %v913_v15 = vmul.f32 %v3258_v3, %v725_v10  ;;  %v729_v16 = vadd.f32 %v728_v14, %v3254_v24  ;;  %v730_v17 = vpop.f32.mrb[27].mxu0  ;;  %1281 = vmatprep.mubr.bf16.mxu1 %v1060_v12  ;;  %vm848_vm8 = vcmp.ge.f32.partialorder %v725_v10, 0.0 }
 0x1cd   : > { %v914_v18 = vmul.f32 %v3258_v3, %v727_v13  ;;  %v731_v19 = vadd.f32 %v730_v17, %v3256_v25  ;;  %1282 = vmatmul.mubr.bf16.gmra.mrb[20].mxu1 %v1059_v9  ;;  %vm849_vm9 = vcmp.ge.f32.partialorder %v727_v13, 0.0 }
 0x1ce   : > { %vm850_vm10 = vcmp.ge.f32.partialorder %v729_v16, 0.0  ;;  %v915_v20 = vmul.f32 %v3258_v3, %v729_v16  ;;  %v977_v22 = vsel %vm848_vm8, %v725_v10, %v913_v15 }
 0x1cf   : > { %vm851_vm11 = vcmp.ge.f32.partialorder %v731_v19, 0.0  ;;  %v916_v21 = vmul.f32 %v3258_v3, %v731_v19  ;;  %v978_v27 = vsel %vm849_vm9, %v727_v13, %v914_v18 }
 0x1d0   : > { %v979_v23 = vsel %vm850_vm10, %v729_v16, %v915_v20 }
 0x1d1   : > { %v734_v26 = vpop.f32.mrb[28].mxu0  ;;  %v980_v28 = vsel %vm851_vm11, %v731_v19, %v916_v21  ;;  %v1061_v29 = vpack.c.bf16 %v979_v23, %v977_v22 }
 0x1d2   : > { %v735_v30 = vadd.f32 %v734_v26, %v3254_v24  ;;  %v736_v31 = vpop.f32.mrb[29].mxu0  ;;  %v1062_v32 = vpack.c.bf16 %v980_v28, %v978_v27 }
 0x1d3   : > { %v737_v33 = vadd.f32 %v736_v31, %v3256_v25  ;;  %v738_v34 = vpop.f32.mrb[30].mxu0 }
 0x1d4   : > { %v917_v35 = vmul.f32 %v3258_v3, %v735_v30  ;;  %v739_v36 = vadd.f32 %v738_v34, %v3254_v24  ;;  %v740_v37 = vpop.f32.mrb[31].mxu0  ;;  %1289 = vmatprep.mubr.bf16.mxu1 %v1062_v32  ;;  %vm852_vm12 = vcmp.ge.f32.partialorder %v735_v30, 0.0 }
 0x1d5   : > { %v918_v38 = vmul.f32 %v3258_v3, %v737_v33  ;;  %v741_v39 = vadd.f32 %v740_v37, %v3256_v25  ;;  %1290 = vmatmul.mubr.bf16.gmra.mrb[24].mxu1 %v1061_v29  ;;  %vm853_vm13 = vcmp.ge.f32.partialorder %v737_v33, 0.0 }
 0x1d6   : > { %vm854_vm14 = vcmp.ge.f32.partialorder %v739_v36, 0.0  ;;  %v919_v40 = vmul.f32 %v3258_v3, %v739_v36  ;;  %v981_v42 = vsel %vm852_vm12, %v735_v30, %v917_v35 }
 0x1d7   : > { %vm855_vm15 = vcmp.ge.f32.partialorder %v741_v39, 0.0  ;;  %v920_v41 = vmul.f32 %v3258_v3, %v741_v39  ;;  %v982_v45 = vsel %vm853_vm13, %v737_v33, %v918_v38 }
 0x1d8   : > { %v983_v43 = vsel %vm854_vm14, %v739_v36, %v919_v40 }
 0x1d9   : > { %v744_v44 = vpop.f32.mrb[32].mxu0  ;;  %v984_v46 = vsel %vm855_vm15, %v741_v39, %v920_v41  ;;  %v1063_v47 = vpack.c.bf16 %v983_v43, %v981_v42 }
 0x1da   : > { %v745_v48 = vadd.f32 %v744_v44, %v3254_v24  ;;  %v746_v49 = vpop.f32.mrb[33].mxu0  ;;  %v1064_v50 = vpack.c.bf16 %v984_v46, %v982_v45 }
 0x1db   : > { %v747_v51 = vadd.f32 %v746_v49, %v3256_v25  ;;  %v748_v52 = vpop.f32.mrb[34].mxu0 }
 0x1dc   : > { %v921_v53 = vmul.f32 %v3258_v3, %v745_v48  ;;  %v749_v54 = vadd.f32 %v748_v52, %v3254_v24  ;;  %v750_v55 = vpop.f32.mrb[35].mxu0  ;;  %1297 = vmatprep.mubr.bf16.mxu1 %v1064_v50  ;;  %vm856_vm0 = vcmp.ge.f32.partialorder %v745_v48, 0.0 }
 0x1dd   : > { %v922_v56 = vmul.f32 %v3258_v3, %v747_v51  ;;  %v751_v57 = vadd.f32 %v750_v55, %v3256_v25  ;;  %1298 = vmatmul.mubr.bf16.gmra.mrb[28].mxu1 %v1063_v47  ;;  %vm857_vm1 = vcmp.ge.f32.partialorder %v747_v51, 0.0 }
 0x1de   : > { %vm858_vm2 = vcmp.ge.f32.partialorder %v749_v54, 0.0  ;;  %v923_v58 = vmul.f32 %v3258_v3, %v749_v54  ;;  %v985_v60 = vsel %vm856_vm0, %v745_v48, %v921_v53 }
 0x1df   : > { %vm859_vm3 = vcmp.ge.f32.partialorder %v751_v57, 0.0  ;;  %v924_v59 = vmul.f32 %v3258_v3, %v751_v57  ;;  %v986_v63 = vsel %vm857_vm1, %v747_v51, %v922_v56 }
 0x1e0   : > { %v987_v61 = vsel %vm858_vm2, %v749_v54, %v923_v58 }
 0x1e1   : > { %v754_v62 = vpop.f32.mrb[36].mxu0  ;;  %v988_v0 = vsel %vm859_vm3, %v751_v57, %v924_v59  ;;  %v1065_v1 = vpack.c.bf16 %v987_v61, %v985_v60 }
 0x1e2   : > { %v755_v2 = vadd.f32 %v754_v62, %v3254_v24  ;;  %v756_v4 = vpop.f32.mrb[37].mxu0  ;;  %v1066_v5 = vpack.c.bf16 %v988_v0, %v986_v63 }
 0x1e3   : > { %v757_v6 = vadd.f32 %v756_v4, %v3256_v25  ;;  %v758_v7 = vpop.f32.mrb[38].mxu0 }
 0x1e4   : > { %v925_v8 = vmul.f32 %v3258_v3, %v755_v2  ;;  %v759_v9 = vadd.f32 %v758_v7, %v3254_v24  ;;  %v760_v10 = vpop.f32.mrb[39].mxu0  ;;  %1305 = vmatprep.mubr.bf16.mxu1 %v1066_v5  ;;  %vm860_vm4 = vcmp.ge.f32.partialorder %v755_v2, 0.0 }
 0x1e5   : > { %v926_v11 = vmul.f32 %v3258_v3, %v757_v6  ;;  %v761_v12 = vadd.f32 %v760_v10, %v3256_v25  ;;  %1306 = vmatmul.mubr.bf16.gmra.mrb[32].mxu1 %v1065_v1  ;;  %vm861_vm5 = vcmp.ge.f32.partialorder %v757_v6, 0.0 }
 0x1e6   : > { %vm862_vm6 = vcmp.ge.f32.partialorder %v759_v9, 0.0  ;;  %v927_v13 = vmul.f32 %v3258_v3, %v759_v9  ;;  %v989_v15 = vsel %vm860_vm4, %v755_v2, %v925_v8 }
 0x1e7   : > { %vm863_vm7 = vcmp.ge.f32.partialorder %v761_v12, 0.0  ;;  %v928_v14 = vmul.f32 %v3258_v3, %v761_v12  ;;  %v990_v18 = vsel %vm861_vm5, %v757_v6, %v926_v11 }
 0x1e8   : > { %v991_v16 = vsel %vm862_vm6, %v759_v9, %v927_v13 }
 0x1e9   : > { %v764_v17 = vpop.f32.mrb[40].mxu0  ;;  %v992_v19 = vsel %vm863_vm7, %v761_v12, %v928_v14  ;;  %v1067_v20 = vpack.c.bf16 %v991_v16, %v989_v15 }
 0x1ea   : > { %v765_v21 = vadd.f32 %v764_v17, %v3254_v24  ;;  %v766_v22 = vpop.f32.mrb[41].mxu0  ;;  %v1068_v23 = vpack.c.bf16 %v992_v19, %v990_v18 }
 0x1eb   : > { %v767_v26 = vadd.f32 %v766_v22, %v3256_v25  ;;  %v768_v27 = vpop.f32.mrb[42].mxu0 }
 0x1ec   : > { %v929_v28 = vmul.f32 %v3258_v3, %v765_v21  ;;  %v769_v29 = vadd.f32 %v768_v27, %v3254_v24  ;;  %v770_v30 = vpop.f32.mrb[43].mxu0  ;;  %1313 = vmatprep.mubr.bf16.mxu1 %v1068_v23  ;;  %vm864_vm8 = vcmp.ge.f32.partialorder %v765_v21, 0.0 }
 0x1ed   : > { %v930_v31 = vmul.f32 %v3258_v3, %v767_v26  ;;  %v771_v32 = vadd.f32 %v770_v30, %v3256_v25  ;;  %1314 = vmatmul.mubr.bf16.gmra.mrb[36].mxu1 %v1067_v20  ;;  %vm865_vm9 = vcmp.ge.f32.partialorder %v767_v26, 0.0 }
 0x1ee   : > { %vm866_vm10 = vcmp.ge.f32.partialorder %v769_v29, 0.0  ;;  %v931_v33 = vmul.f32 %v3258_v3, %v769_v29  ;;  %v993_v35 = vsel %vm864_vm8, %v765_v21, %v929_v28 }
 0x1ef   : > { %vm867_vm11 = vcmp.ge.f32.partialorder %v771_v32, 0.0  ;;  %v932_v34 = vmul.f32 %v3258_v3, %v771_v32  ;;  %v994_v38 = vsel %vm865_vm9, %v767_v26, %v930_v31 }
 0x1f0   : > { %v995_v36 = vsel %vm866_vm10, %v769_v29, %v931_v33 }
 0x1f1   : > { %v774_v37 = vpop.f32.mrb[44].mxu0  ;;  %v996_v39 = vsel %vm867_vm11, %v771_v32, %v932_v34  ;;  %v1069_v40 = vpack.c.bf16 %v995_v36, %v993_v35 }
 0x1f2   : > { %v775_v41 = vadd.f32 %v774_v37, %v3254_v24  ;;  %v776_v42 = vpop.f32.mrb[45].mxu0  ;;  %v1070_v43 = vpack.c.bf16 %v996_v39, %v994_v38 }
 0x1f3   : > { %v777_v44 = vadd.f32 %v776_v42, %v3256_v25  ;;  %v778_v45 = vpop.f32.mrb[46].mxu0 }
 0x1f4   : > { %v933_v46 = vmul.f32 %v3258_v3, %v775_v41  ;;  %v779_v47 = vadd.f32 %v778_v45, %v3254_v24  ;;  %v780_v48 = vpop.f32.mrb[47].mxu0  ;;  %1321 = vmatprep.mubr.bf16.mxu1 %v1070_v43  ;;  %vm868_vm12 = vcmp.ge.f32.partialorder %v775_v41, 0.0 }
 0x1f5   : > { %v934_v49 = vmul.f32 %v3258_v3, %v777_v44  ;;  %v781_v50 = vadd.f32 %v780_v48, %v3256_v25  ;;  %1322 = vmatmul.mubr.bf16.gmra.mrb[40].mxu1 %v1069_v40  ;;  %vm869_vm13 = vcmp.ge.f32.partialorder %v777_v44, 0.0 }
 0x1f6   : > { %vm870_vm14 = vcmp.ge.f32.partialorder %v779_v47, 0.0  ;;  %v935_v51 = vmul.f32 %v3258_v3, %v779_v47  ;;  %v997_v53 = vsel %vm868_vm12, %v775_v41, %v933_v46 }
 0x1f7   : > { %vm871_vm15 = vcmp.ge.f32.partialorder %v781_v50, 0.0  ;;  %v936_v52 = vmul.f32 %v3258_v3, %v781_v50  ;;  %v998_v56 = vsel %vm869_vm13, %v777_v44, %v934_v49 }
 0x1f8   : > { %v999_v54 = vsel %vm870_vm14, %v779_v47, %v935_v51 }
 0x1f9   : > { %v784_v55 = vpop.f32.mrb[48].mxu0  ;;  %v1000_v57 = vsel %vm871_vm15, %v781_v50, %v936_v52  ;;  %v1071_v58 = vpack.c.bf16 %v999_v54, %v997_v53 }
 0x1fa   : > { %v785_v59 = vadd.f32 %v784_v55, %v3254_v24  ;;  %v786_v60 = vpop.f32.mrb[49].mxu0  ;;  %v1072_v61 = vpack.c.bf16 %v1000_v57, %v998_v56 }
 0x1fb   : > { %v787_v62 = vadd.f32 %v786_v60, %v3256_v25  ;;  %v788_v63 = vpop.f32.mrb[50].mxu0 }
 0x1fc   : > { %v937_v0 = vmul.f32 %v3258_v3, %v785_v59  ;;  %v789_v1 = vadd.f32 %v788_v63, %v3254_v24  ;;  %v790_v2 = vpop.f32.mrb[51].mxu0  ;;  %1329 = vmatprep.mubr.bf16.mxu1 %v1072_v61  ;;  %vm872_vm0 = vcmp.ge.f32.partialorder %v785_v59, 0.0 }
 0x1fd   : > { %v938_v4 = vmul.f32 %v3258_v3, %v787_v62  ;;  %v791_v5 = vadd.f32 %v790_v2, %v3256_v25  ;;  %1330 = vmatmul.mubr.bf16.gmra.mrb[44].mxu1 %v1071_v58  ;;  %vm873_vm1 = vcmp.ge.f32.partialorder %v787_v62, 0.0 }
 0x1fe   : > { %vm874_vm2 = vcmp.ge.f32.partialorder %v789_v1, 0.0  ;;  %v939_v6 = vmul.f32 %v3258_v3, %v789_v1  ;;  %v1001_v8 = vsel %vm872_vm0, %v785_v59, %v937_v0 }
 0x1ff   : > { %vm875_vm3 = vcmp.ge.f32.partialorder %v791_v5, 0.0  ;;  %v940_v7 = vmul.f32 %v3258_v3, %v791_v5  ;;  %v1002_v11 = vsel %vm873_vm1, %v787_v62, %v938_v4 }
 0x200   : > { %v1003_v9 = vsel %vm874_vm2, %v789_v1, %v939_v6 }
 0x201   : > { %v794_v10 = vpop.f32.mrb[52].mxu0  ;;  %v1004_v12 = vsel %vm875_vm3, %v791_v5, %v940_v7  ;;  %v1073_v13 = vpack.c.bf16 %v1003_v9, %v1001_v8  ;;  %v1017_v7 = vld [vmem:[#allocation2] sm:$0xff] }
 0x202   : > { %v795_v14 = vadd.f32 %v794_v10, %v3254_v24  ;;  %v796_v15 = vpop.f32.mrb[53].mxu0  ;;  %v1074_v16 = vpack.c.bf16 %v1004_v12, %v1002_v11  ;;  %v1018_v10 = vld [vmem:[#allocation2 + $0x8] sm:$0xff] }
 0x203   : > { %v797_v17 = vadd.f32 %v796_v15, %v3256_v25  ;;  %v798_v18 = vpop.f32.mrb[54].mxu0  ;;  %v1019_v15 = vld [vmem:[#allocation2 + $0x10] sm:$0xff] }
 0x204   : > { %v941_v19 = vmul.f32 %v3258_v3, %v795_v14  ;;  %v799_v20 = vadd.f32 %v798_v18, %v3254_v24  ;;  %v800_v21 = vpop.f32.mrb[55].mxu0  ;;  %1337 = vmatprep.mubr.bf16.mxu1 %v1074_v16  ;;  %vm876_vm4 = vcmp.ge.f32.partialorder %v795_v14, 0.0 }
 0x205   : > { %v942_v22 = vmul.f32 %v3258_v3, %v797_v17  ;;  %v801_v23 = vadd.f32 %v800_v21, %v3256_v25  ;;  %1338 = vmatmul.mubr.bf16.gmra.mrb[48].mxu1 %v1073_v13  ;;  %vm877_vm5 = vcmp.ge.f32.partialorder %v797_v17, 0.0 }
 0x206   : > { %vm878_vm6 = vcmp.ge.f32.partialorder %v799_v20, 0.0  ;;  %v943_v26 = vmul.f32 %v3258_v3, %v799_v20  ;;  %v1005_v28 = vsel %vm876_vm4, %v795_v14, %v941_v19  ;;  %v1020_v19 = vld [vmem:[#allocation2 + $0x18] sm:$0xff] }
 0x207   : > { %vm879_vm7 = vcmp.ge.f32.partialorder %v801_v23, 0.0  ;;  %v944_v27 = vmul.f32 %v3258_v3, %v801_v23  ;;  %v1006_v31 = vsel %vm877_vm5, %v797_v17, %v942_v22 }
 0x208   : > { %v1007_v29 = vsel %vm878_vm6, %v799_v20, %v943_v26 }
 0x209   : > { %v804_v30 = vpop.f32.mrb[56].mxu0  ;;  %v1008_v32 = vsel %vm879_vm7, %v801_v23, %v944_v27  ;;  %v1075_v33 = vpack.c.bf16 %v1007_v29, %v1005_v28  ;;  %v1021_v27 = vld [vmem:[#allocation2 + $0x20] sm:$0xff] }
 0x20a   : > { %v805_v34 = vadd.f32 %v804_v30, %v3254_v24  ;;  %v806_v35 = vpop.f32.mrb[57].mxu0  ;;  %v1076_v36 = vpack.c.bf16 %v1008_v32, %v1006_v31  ;;  %v1022_v31 = vld [vmem:[#allocation2 + $0x28] sm:$0xff] }
 0x20b   : > { %v807_v37 = vadd.f32 %v806_v35, %v3256_v25  ;;  %v808_v38 = vpop.f32.mrb[58].mxu0 }
 0x20c   : > { %v945_v39 = vmul.f32 %v3258_v3, %v805_v34  ;;  %v809_v40 = vadd.f32 %v808_v38, %v3254_v24  ;;  %v810_v41 = vpop.f32.mrb[59].mxu0  ;;  %1345 = vmatprep.mubr.bf16.mxu1 %v1076_v36  ;;  %vm880_vm8 = vcmp.ge.f32.partialorder %v805_v34, 0.0 }
 0x20d   : > { %v946_v42 = vmul.f32 %v3258_v3, %v807_v37  ;;  %v811_v43 = vadd.f32 %v810_v41, %v3256_v25  ;;  %1346 = vmatmul.mubr.bf16.gmra.mrb[52].mxu1 %v1075_v33  ;;  %vm881_vm9 = vcmp.ge.f32.partialorder %v807_v37, 0.0  ;;  %v1024_v41 = vld [vmem:[#allocation2 + $0x38] sm:$0xff] }
 0x20e   : > { %vm882_vm10 = vcmp.ge.f32.partialorder %v809_v40, 0.0  ;;  %v947_v44 = vmul.f32 %v3258_v3, %v809_v40  ;;  %v1009_v46 = vsel %vm880_vm8, %v805_v34, %v945_v39 }
 0x20f   : > { %vm883_vm11 = vcmp.ge.f32.partialorder %v811_v43, 0.0  ;;  %v948_v45 = vmul.f32 %v3258_v3, %v811_v43  ;;  %v1010_v49 = vsel %vm881_vm9, %v807_v37, %v946_v42  ;;  %v1023_v37 = vld [vmem:[#allocation2 + $0x30] sm:$0xff] }
 0x210   : > { %v1011_v47 = vsel %vm882_vm10, %v809_v40, %v947_v44 }
 0x211   : > { %v814_v48 = vpop.f32.mrb[60].mxu0  ;;  %v1012_v50 = vsel %vm883_vm11, %v811_v43, %v948_v45  ;;  %v1077_v51 = vpack.c.bf16 %v1011_v47, %v1009_v46  ;;  %v1025_v47 = vld [vmem:[#allocation2 + $0x40] sm:$0xff] }
 0x212   : > { %v815_v52 = vadd.f32 %v814_v48, %v3254_v24  ;;  %v816_v53 = vpop.f32.mrb[61].mxu0  ;;  %v1078_v54 = vpack.c.bf16 %v1012_v50, %v1010_v49 }
 0x213   : > { %v817_v55 = vadd.f32 %v816_v53, %v3256_v25  ;;  %v818_v56 = vpop.f32.mrb[62].mxu0 }
 0x214   : > { %v949_v57 = vmul.f32 %v3258_v3, %v815_v52  ;;  %v819_v58 = vadd.f32 %v818_v56, %v3254_v24  ;;  %v820_v59 = vpop.f32.mrb[63].mxu0  ;;  %1353 = vmatprep.mubr.bf16.mxu1 %v1078_v54  ;;  %vm884_vm12 = vcmp.ge.f32.partialorder %v815_v52, 0.0 }
 0x215   : > { %v950_v60 = vmul.f32 %v3258_v3, %v817_v55  ;;  %v821_v61 = vadd.f32 %v820_v59, %v3256_v25  ;;  %1354 = vmatmul.mubr.bf16.gmra.mrb[56].mxu1 %v1077_v51  ;;  %vm885_vm13 = vcmp.ge.f32.partialorder %v817_v55, 0.0  ;;  %v1026_v51 = vld [vmem:[#allocation2 + $0x48] sm:$0xff] }
 0x216   : > { %vm886_vm14 = vcmp.ge.f32.partialorder %v819_v58, 0.0  ;;  %v951_v62 = vmul.f32 %v3258_v3, %v819_v58  ;;  %v1013_v0 = vsel %vm884_vm12, %v815_v52, %v949_v57  ;;  %v1027_v57 = vld [vmem:[#allocation2 + $0x50] sm:$0xff] }
 0x217   : > { %vm887_vm15 = vcmp.ge.f32.partialorder %v821_v61, 0.0  ;;  %v952_v63 = vmul.f32 %v3258_v3, %v821_v61  ;;  %v1014_v2 = vsel %vm885_vm13, %v817_v55, %v950_v60 }
 0x218   : > { %v1015_v1 = vsel %vm886_vm14, %v819_v58, %v951_v62 }
 0x219   : > { %v1016_v4 = vsel %vm887_vm15, %v821_v61, %v952_v63  ;;  %v1079_v24 = vpack.c.bf16 %v1015_v1, %v1013_v0  ;;  %v1028_v61 = vld [vmem:[#allocation2 + $0x58] sm:$0xff] }
 0x21a   : > { %v1080_v5 = vpack.c.bf16 %v1016_v4, %v1014_v2  ;;  %v1029_v4 = vld [vmem:[#allocation2 + $0x60] sm:$0xff] }
 0x21c   : > { %1361 = vmatprep.mubr.bf16.mxu1 %v1080_v5 }
 0x21d   : > { %1362 = vmatmul.mubr.bf16.gmra.mrb[60].mxu1 %v1079_v24 }
 0x278   : > { %v2267_v6 = vpop.f32.mrb[0].mxu1 }
 0x279   : > { %v2268_v8 = vpop.f32.mrb[1].mxu1 }
 0x27a   : > { %v2269_v25 = vadd.f32 %v2268_v8, %v2267_v6  ;;  %v2270_v9 = vpop.f32.mrb[2].mxu1 }
 0x27b   : > { %v2271_v11 = vpop.f32.mrb[3].mxu1 }
 0x27c   : > { %v1370_v12 = vadd.f32 %v2269_v25, %v1017_v7  ;;  %v2272_v13 = vadd.f32 %v2271_v11, %v2270_v9  ;;  %v1030_v7 = vld [vmem:[#allocation2 + $0x68] sm:$0xff] }
 0x27e   : > { %1402 = vst [vmem:[#allocation2] sm:$0xff] %v1370_v12  ;;  %v1371_v14 = vadd.f32 %v2272_v13, %v1018_v10  ;;  %v1031_v12 = vld [vmem:[#allocation2 + $0x70] sm:$0xff] }
 0x280   : > { %1403 = vst [vmem:[#allocation2 + $0x8] sm:$0xff] %v1371_v14  ;;  %v2273_v3 = vpop.f32.mrb[4].mxu1 }
 0x281   : > { %v2274_v16 = vpop.f32.mrb[5].mxu1 }
 0x282   : > { %v2275_v17 = vadd.f32 %v2274_v16, %v2273_v3  ;;  %v2276_v18 = vpop.f32.mrb[6].mxu1 }
 0x283   : > { %v2277_v20 = vpop.f32.mrb[7].mxu1 }
 0x284   : > { %v1372_v21 = vadd.f32 %v2275_v17, %v1019_v15  ;;  %v2278_v22 = vadd.f32 %v2277_v20, %v2276_v18  ;;  %v1032_v15 = vld [vmem:[#allocation2 + $0x78] sm:$0xff] }
 0x286   : > { %1404 = vst [vmem:[#allocation2 + $0x10] sm:$0xff] %v1372_v21  ;;  %v1373_v23 = vadd.f32 %v2278_v22, %v1020_v19  ;;  %v1033_v21 = vld [vmem:[#allocation2 + $0x80] sm:$0xff] }
 0x288   : > { %1405 = vst [vmem:[#allocation2 + $0x18] sm:$0xff] %v1373_v23  ;;  %v2279_v26 = vpop.f32.mrb[8].mxu1 }
 0x289   : > { %v2280_v28 = vpop.f32.mrb[9].mxu1 }
 0x28a   : > { %v2281_v29 = vadd.f32 %v2280_v28, %v2279_v26  ;;  %v2282_v30 = vpop.f32.mrb[10].mxu1 }
 0x28b   : > { %v2283_v32 = vpop.f32.mrb[11].mxu1 }
 0x28c   : > { %v1374_v33 = vadd.f32 %v2281_v29, %v1021_v27  ;;  %v2284_v34 = vadd.f32 %v2283_v32, %v2282_v30  ;;  %v1034_v27 = vld [vmem:[#allocation2 + $0x88] sm:$0xff] }
 0x28e   : > { %1406 = vst [vmem:[#allocation2 + $0x20] sm:$0xff] %v1374_v33  ;;  %v1375_v35 = vadd.f32 %v2284_v34, %v1022_v31  ;;  %v1035_v33 = vld [vmem:[#allocation2 + $0x90] sm:$0xff] }
 0x290   : > { %1407 = vst [vmem:[#allocation2 + $0x28] sm:$0xff] %v1375_v35  ;;  %v2285_v36 = vpop.f32.mrb[12].mxu1 }
 0x291   : > { %v2286_v38 = vpop.f32.mrb[13].mxu1 }
 0x292   : > { %v2287_v39 = vadd.f32 %v2286_v38, %v2285_v36  ;;  %v2288_v40 = vpop.f32.mrb[14].mxu1 }
 0x293   : > { %v2289_v42 = vpop.f32.mrb[15].mxu1 }
 0x294   : > { %v1376_v43 = vadd.f32 %v2287_v39, %v1023_v37  ;;  %v2290_v44 = vadd.f32 %v2289_v42, %v2288_v40  ;;  %v1036_v37 = vld [vmem:[#allocation2 + $0x98] sm:$0xff] }
 0x296   : > { %1408 = vst [vmem:[#allocation2 + $0x30] sm:$0xff] %v1376_v43  ;;  %v1377_v45 = vadd.f32 %v2290_v44, %v1024_v41  ;;  %v1037_v43 = vld [vmem:[#allocation2 + $0xa0] sm:$0xff] }
 0x298   : > { %1409 = vst [vmem:[#allocation2 + $0x38] sm:$0xff] %v1377_v45  ;;  %v2291_v46 = vpop.f32.mrb[16].mxu1 }
 0x299   : > { %v2292_v48 = vpop.f32.mrb[17].mxu1 }
 0x29a   : > { %v2293_v49 = vadd.f32 %v2292_v48, %v2291_v46  ;;  %v2294_v50 = vpop.f32.mrb[18].mxu1 }
 0x29b   : > { %v2295_v52 = vpop.f32.mrb[19].mxu1 }
 0x29c   : > { %v1378_v53 = vadd.f32 %v2293_v49, %v1025_v47  ;;  %v2296_v54 = vadd.f32 %v2295_v52, %v2294_v50  ;;  %v1038_v47 = vld [vmem:[#allocation2 + $0xa8] sm:$0xff] }
 0x29e   : > { %1410 = vst [vmem:[#allocation2 + $0x40] sm:$0xff] %v1378_v53  ;;  %v1379_v55 = vadd.f32 %v2296_v54, %v1026_v51  ;;  %v1039_v53 = vld [vmem:[#allocation2 + $0xb0] sm:$0xff] }
 0x2a0   : > { %1411 = vst [vmem:[#allocation2 + $0x48] sm:$0xff] %v1379_v55  ;;  %v2297_v56 = vpop.f32.mrb[20].mxu1 }
 0x2a1   : > { %v2298_v58 = vpop.f32.mrb[21].mxu1 }
 0x2a2   : > { %v2299_v59 = vadd.f32 %v2298_v58, %v2297_v56  ;;  %v2300_v60 = vpop.f32.mrb[22].mxu1 }
 0x2a3   : > { %v2301_v62 = vpop.f32.mrb[23].mxu1 }
 0x2a4   : > { %v1380_v63 = vadd.f32 %v2299_v59, %v1027_v57  ;;  %v2302_v0 = vadd.f32 %v2301_v62, %v2300_v60  ;;  %v1040_v57 = vld [vmem:[#allocation2 + $0xb8] sm:$0xff] }
 0x2a6   : > { %1412 = vst [vmem:[#allocation2 + $0x50] sm:$0xff] %v1380_v63  ;;  %v1381_v1 = vadd.f32 %v2302_v0, %v1028_v61  ;;  %v1041_v63 = vld [vmem:[#allocation2 + $0xc0] sm:$0xff] }
 0x2a8   : > { %1413 = vst [vmem:[#allocation2 + $0x58] sm:$0xff] %v1381_v1  ;;  %v2303_v2 = vpop.f32.mrb[24].mxu1 }
 0x2a9   : > { %v2304_v24 = vpop.f32.mrb[25].mxu1 }
 0x2aa   : > { %v2305_v5 = vadd.f32 %v2304_v24, %v2303_v2  ;;  %v2306_v6 = vpop.f32.mrb[26].mxu1 }
 0x2ab   : > { %v2307_v8 = vpop.f32.mrb[27].mxu1 }
 0x2ac   : > { %v1382_v25 = vadd.f32 %v2305_v5, %v1029_v4  ;;  %v2308_v9 = vadd.f32 %v2307_v8, %v2306_v6  ;;  %v1042_v4 = vld [vmem:[#allocation2 + $0xc8] sm:$0xff] }
 0x2ae   : > { %1414 = vst [vmem:[#allocation2 + $0x60] sm:$0xff] %v1382_v25  ;;  %v1383_v10 = vadd.f32 %v2308_v9, %v1030_v7  ;;  %v1043_v25 = vld [vmem:[#allocation2 + $0xd0] sm:$0xff] }
 0x2b0   : > { %1415 = vst [vmem:[#allocation2 + $0x68] sm:$0xff] %v1383_v10  ;;  %v2309_v11 = vpop.f32.mrb[28].mxu1 }
 0x2b1   : > { %v2310_v13 = vpop.f32.mrb[29].mxu1 }
 0x2b2   : > { %v2311_v14 = vadd.f32 %v2310_v13, %v2309_v11  ;;  %v2312_v3 = vpop.f32.mrb[30].mxu1 }
 0x2b3   : > { %v2313_v16 = vpop.f32.mrb[31].mxu1 }
 0x2b4   : > { %v1384_v17 = vadd.f32 %v2311_v14, %v1031_v12  ;;  %v2314_v18 = vadd.f32 %v2313_v16, %v2312_v3  ;;  %v1044_v12 = vld [vmem:[#allocation2 + $0xd8] sm:$0xff] }
 0x2b6   : > { %1416 = vst [vmem:[#allocation2 + $0x70] sm:$0xff] %v1384_v17  ;;  %v1385_v19 = vadd.f32 %v2314_v18, %v1032_v15  ;;  %v1045_v17 = vld [vmem:[#allocation2 + $0xe0] sm:$0xff] }
 0x2b8   : > { %1417 = vst [vmem:[#allocation2 + $0x78] sm:$0xff] %v1385_v19  ;;  %v2315_v20 = vpop.f32.mrb[32].mxu1 }
 0x2b9   : > { %v2316_v22 = vpop.f32.mrb[33].mxu1 }
 0x2ba   : > { %v2317_v23 = vadd.f32 %v2316_v22, %v2315_v20  ;;  %v2318_v26 = vpop.f32.mrb[34].mxu1 }
 0x2bb   : > { %v2319_v28 = vpop.f32.mrb[35].mxu1 }
 0x2bc   : > { %v1386_v29 = vadd.f32 %v2317_v23, %v1033_v21  ;;  %v2320_v30 = vadd.f32 %v2319_v28, %v2318_v26  ;;  %v1046_v21 = vld [vmem:[#allocation2 + $0xe8] sm:$0xff] }
 0x2be   : > { %1418 = vst [vmem:[#allocation2 + $0x80] sm:$0xff] %v1386_v29  ;;  %v1387_v31 = vadd.f32 %v2320_v30, %v1034_v27  ;;  %v1047_v29 = vld [vmem:[#allocation2 + $0xf0] sm:$0xff] }
 0x2c0   : > { %1419 = vst [vmem:[#allocation2 + $0x88] sm:$0xff] %v1387_v31  ;;  %v2321_v32 = vpop.f32.mrb[36].mxu1 }
 0x2c1   : > { %v2322_v34 = vpop.f32.mrb[37].mxu1 }
 0x2c2   : > { %v2323_v35 = vadd.f32 %v2322_v34, %v2321_v32  ;;  %v2324_v36 = vpop.f32.mrb[38].mxu1 }
 0x2c3   : > { %v2325_v38 = vpop.f32.mrb[39].mxu1 }
 0x2c4   : > { %v1388_v39 = vadd.f32 %v2323_v35, %v1035_v33  ;;  %v2326_v40 = vadd.f32 %v2325_v38, %v2324_v36  ;;  %v1048_v33 = vld [vmem:[#allocation2 + $0xf8] sm:$0xff]  ;;  %v1438_v38 = vld [vmem:[%s3143_s22] sm:$0xff] (!%p2238_p2) }
 0x2c6   : > { %1420 = vst [vmem:[#allocation2 + $0x90] sm:$0xff] %v1388_v39  ;;  %v1389_v41 = vadd.f32 %v2326_v40, %v1036_v37  ;;  %v1470_v39 = vld [vmem:[#allocation2] sm:$0xff] (!%p2238_p2) }
 0x2c7   : > { %v3393_v40 = vld [vmem:[%s3979_s15] ss:$0 sm:$0xff] (!%p2238_p2) }
 0x2c8   : > { %1421 = vst [vmem:[#allocation2 + $0x98] sm:$0xff] %v1389_v41  ;;  %v2327_v42 = vpop.f32.mrb[40].mxu1  ;;  %v1502_v41 = vadd.f32 (!%p2238_p2), %v1470_v39, %v1438_v38  ;;  %v1486_v38 = vld [vmem:[#allocation2 + $0x80] sm:$0xff] (!%p2238_p2)  ;;  %v1455_v39 = vld [vmem:[%s3143_s22 + $0x88] sm:$0xff] (!%p2238_p2) }
 0x2c9   : > { %v2328_v44 = vpop.f32.mrb[41].mxu1 }
 0x2ca   : > { %v2329_v45 = vadd.f32 %v2328_v44, %v2327_v42  ;;  %v2330_v46 = vpop.f32.mrb[42].mxu1  ;;  %v1440_v42 = vld [vmem:[%s3143_s22 + $0x10] sm:$0xff] (!%p2238_p2)  ;;  %v1439_v44 = vld [vmem:[%s3143_s22 + $0x8] sm:$0xff] (!%p2238_p2) }
 0x2cb   : > { %v2331_v48 = vpop.f32.mrb[43].mxu1 }
 0x2cc   : > { %v1390_v49 = vadd.f32 %v2329_v45, %v1037_v43  ;;  %v2332_v50 = vadd.f32 %v2331_v48, %v2330_v46  ;;  %v1472_v43 = vld [vmem:[#allocation2 + $0x10] sm:$0xff] (!%p2238_p2)  ;;  %v1471_v46 = vld [vmem:[#allocation2 + $0x8] sm:$0xff] (!%p2238_p2)  ;;  %v1473_v48 = vld [vmem:[#allocation2 + $0x18] sm:$0xff] (!%p2238_p2) }
 0x2cd   : > { %v1504_v45 = vadd.f32 (!%p2238_p2), %v1472_v43, %v1440_v42 }
 0x2ce   : > { %1422 = vst [vmem:[#allocation2 + $0xa0] sm:$0xff] %v1390_v49  ;;  %v1391_v51 = vadd.f32 %v2332_v50, %v1038_v47  ;;  %v1441_v47 = vld [vmem:[%s3143_s22 + $0x18] sm:$0xff] (!%p2238_p2)  ;;  %v3399_v49 = vadd.f32 (!%p2238_p2), %v3393_v40, %v1502_v41  ;;  %v1503_v50 = vadd.f32 (!%p2238_p2), %v1471_v46, %v1439_v44  ;;  %v1487_v41 = vld [vmem:[#allocation2 + $0x88] sm:$0xff] (!%p2238_p2)  ;;  %v1456_v46 = vld [vmem:[%s3143_s22 + $0x90] sm:$0xff] (!%p2238_p2) }
 0x2d0   : > { %1423 = vst [vmem:[#allocation2 + $0xa8] sm:$0xff] %v1391_v51  ;;  %v2333_v52 = vpop.f32.mrb[44].mxu1  ;;  %v1505_v51 = vadd.f32 (!%p2238_p2), %v1473_v48, %v1441_v47  ;;  %1573 = vadd.xlane.f32.xlu0 (!%p2238_p2), %v3399_v49  ;;  %v1488_v47 = vld [vmem:[#allocation2 + $0x90] sm:$0xff] (!%p2238_p2)  ;;  %v1457_v48 = vld [vmem:[%s3143_s22 + $0x98] sm:$0xff] (!%p2238_p2) }
 0x2d1   : > { %v2334_v54 = vpop.f32.mrb[45].mxu1 }
 0x2d2   : > { %v2335_v55 = vadd.f32 %v2334_v54, %v2333_v52  ;;  %v2336_v56 = vpop.f32.mrb[46].mxu1  ;;  %v1442_v52 = vld [vmem:[%s3143_s22 + $0x20] sm:$0xff] (!%p2238_p2)  ;;  %v1443_v54 = vld [vmem:[%s3143_s22 + $0x28] sm:$0xff] (!%p2238_p2) }
 0x2d3   : > { %v2337_v58 = vpop.f32.mrb[47].mxu1 }
 0x2d4   : > { %v1392_v59 = vadd.f32 %v2335_v55, %v1039_v53  ;;  %v2338_v60 = vadd.f32 %v2337_v58, %v2336_v56  ;;  %v1474_v53 = vld [vmem:[#allocation2 + $0x20] sm:$0xff] (!%p2238_p2)  ;;  %v3404_v55 = vadd.f32 (!%p2238_p2), %v3393_v40, %v1504_v45  ;;  %v1475_v56 = vld [vmem:[#allocation2 + $0x28] sm:$0xff] (!%p2238_p2)  ;;  %v1519_v45 = vadd.f32 (!%p2238_p2), %v1487_v41, %v1455_v39 }
 0x2d5   : > { %v1506_v58 = vadd.f32 (!%p2238_p2), %v1474_v53, %v1442_v52  ;;  %v1520_v52 = vadd.f32 (!%p2238_p2), %v1488_v47, %v1456_v46  ;;  %v1468_v47 = vld [vmem:[%s3143_s22 + $0xf0] sm:$0xff] (!%p2238_p2) }
 0x2d6   : > { %1424 = vst [vmem:[#allocation2 + $0xb0] sm:$0xff] %v1392_v59  ;;  %v1393_v61 = vadd.f32 %v2338_v60, %v1040_v57  ;;  %v3408_v57 = vadd.f32 (!%p2238_p2), %v3393_v40, %v1503_v50  ;;  %1577 = vadd.xlane.f32.xlu1 (!%p2238_p2), %v3404_v55  ;;  %v3412_v59 = vadd.f32 (!%p2238_p2), %v3393_v40, %v1505_v51  ;;  %v1489_v50 = vld [vmem:[#allocation2 + $0x98] sm:$0xff] (!%p2238_p2) }
 0x2d7   : > { %v1507_v60 = vadd.f32 (!%p2238_p2), %v1475_v56, %v1443_v54  ;;  %v3482_v53 = vadd.f32 (!%p2238_p2), %v3393_v40, %v1519_v45  ;;  %v1521_v54 = vadd.f32 (!%p2238_p2), %v1489_v50, %v1457_v48  ;;  %v1458_v56 = vld [vmem:[%s3143_s22 + $0xa0] sm:$0xff] (!%p2238_p2)  ;;  %v1469_v50 = vld [vmem:[%s3143_s22 + $0xf8] sm:$0xff] (!%p2238_p2) }
 0x2d8   : > { %1425 = vst [vmem:[#allocation2 + $0xb8] sm:$0xff] %v1393_v61  ;;  %v2339_v62 = vpop.f32.mrb[48].mxu1  ;;  %v1444_v61 = vld [vmem:[%s3143_s22 + $0x30] sm:$0xff] (!%p2238_p2)  ;;  %1575 = vadd.xlane.f32.xlu0 (!%p2238_p2), %v3408_v57 }
 0x2d9   : > { %v2340_v0 = vpop.f32.mrb[49].mxu1 }
 0x2da   : > { %v2341_v1 = vadd.f32 %v2340_v0, %v2339_v62  ;;  %v2342_v2 = vpop.f32.mrb[50].mxu1  ;;  %v1476_v62 = vld [vmem:[#allocation2 + $0x30] sm:$0xff] (!%p2238_p2)  ;;  %v1477_v0 = vld [vmem:[#allocation2 + $0x38] sm:$0xff] (!%p2238_p2)  ;;  %1579 = vadd.xlane.f32.xlu1 (!%p2238_p2), %v3412_v59 }
 0x2db   : > { %v2343_v24 = vpop.f32.mrb[51].mxu1 }
 0x2dc   : > { %v1394_v5 = vadd.f32 %v2341_v1, %v1041_v63  ;;  %v2344_v6 = vadd.f32 %v2343_v24, %v2342_v2  ;;  %v1445_v63 = vld [vmem:[%s3143_s22 + $0x38] sm:$0xff] (!%p2238_p2)  ;;  %v3418_v1 = vadd.f32 (!%p2238_p2), %v3393_v40, %v1506_v58  ;;  %v1508_v2 = vadd.f32 (!%p2238_p2), %v1476_v62, %v1444_v61  ;;  %v1490_v58 = vld [vmem:[#allocation2 + $0xa0] sm:$0xff] (!%p2238_p2)  ;;  %v1491_v61 = vld [vmem:[#allocation2 + $0xa8] sm:$0xff] (!%p2238_p2) }
 0x2dd   : > { %v1509_v24 = vadd.f32 (!%p2238_p2), %v1477_v0, %v1445_v63  ;;  %v3488_v62 = vadd.f32 (!%p2238_p2), %v3393_v40, %v1520_v52  ;;  %v1522_v63 = vadd.f32 (!%p2238_p2), %v1490_v58, %v1458_v56  ;;  %v3492_v0 = vadd.f32 (!%p2238_p2), %v3393_v40, %v1521_v54 }
 0x2de   : > { %1426 = vst [vmem:[#allocation2 + $0xc0] sm:$0xff] %v1394_v5  ;;  %v1395_v7 = vadd.f32 %v2344_v6, %v1042_v4  ;;  %v3422_v4 = vadd.f32 (!%p2238_p2), %v3393_v40, %v1507_v60  ;;  %v1446_v5 = vld [vmem:[%s3143_s22 + $0x40] sm:$0xff] (!%p2238_p2)  ;;  %1581 = vadd.xlane.f32.xlu0 (!%p2238_p2), %v3418_v1  ;;  %v1459_v60 = vld [vmem:[%s3143_s22 + $0xa8] sm:$0xff] (!%p2238_p2) }
 0x2df   : > { %v1478_v6 = vld [vmem:[#allocation2 + $0x40] sm:$0xff] (!%p2238_p2) }
 0x2e0   : > { %1427 = vst [vmem:[#allocation2 + $0xc8] sm:$0xff] %v1395_v7  ;;  %v2345_v8 = vpop.f32.mrb[52].mxu1  ;;  %v1447_v7 = vld [vmem:[%s3143_s22 + $0x48] sm:$0xff] (!%p2238_p2)  ;;  %1583 = vadd.xlane.f32.xlu1 (!%p2238_p2), %v3422_v4 }
 0x2e1   : > { %v2346_v9 = vpop.f32.mrb[53].mxu1 }
 0x2e2   : > { %v2347_v10 = vadd.f32 %v2346_v9, %v2345_v8  ;;  %v2348_v11 = vpop.f32.mrb[54].mxu1  ;;  %v1479_v8 = vld [vmem:[#allocation2 + $0x48] sm:$0xff] (!%p2238_p2)  ;;  %v1510_v9 = vadd.f32 (!%p2238_p2), %v1478_v6, %v1446_v5  ;;  %v1492_v5 = vld [vmem:[#allocation2 + $0xb0] sm:$0xff] (!%p2238_p2)  ;;  %v1461_v6 = vld [vmem:[%s3143_s22 + $0xb8] sm:$0xff] (!%p2238_p2) }
 0x2e3   : > { %v2349_v13 = vpop.f32.mrb[55].mxu1 }
 0x2e4   : > { %v1396_v14 = vadd.f32 %v2347_v10, %v1043_v25  ;;  %v2350_v3 = vadd.f32 %v2349_v13, %v2348_v11  ;;  %v3428_v25 = vadd.f32 (!%p2238_p2), %v3393_v40, %v1508_v2  ;;  %v3432_v10 = vadd.f32 (!%p2238_p2), %v3393_v40, %v1509_v24  ;;  %v1480_v13 = vld [vmem:[#allocation2 + $0x50] sm:$0xff] (!%p2238_p2) }
 0x2e5   : > { %v1511_v11 = vadd.f32 (!%p2238_p2), %v1479_v8, %v1447_v7  ;;  %v1523_v2 = vadd.f32 (!%p2238_p2), %v1491_v61, %v1459_v60  ;;  %v1460_v24 = vld [vmem:[%s3143_s22 + $0xb0] sm:$0xff] (!%p2238_p2)  ;;  %v1493_v7 = vld [vmem:[#allocation2 + $0xb8] sm:$0xff] (!%p2238_p2)  ;;  %v3498_v8 = vadd.f32 (!%p2238_p2), %v3393_v40, %v1522_v63 }
 0x2e6   : > { %1428 = vst [vmem:[#allocation2 + $0xd0] sm:$0xff] %v1396_v14  ;;  %v1397_v15 = vadd.f32 %v2350_v3, %v1044_v12  ;;  %v1448_v12 = vld [vmem:[%s3143_s22 + $0x50] sm:$0xff] (!%p2238_p2)  ;;  %v1449_v14 = vld [vmem:[%s3143_s22 + $0x58] sm:$0xff] (!%p2238_p2)  ;;  %1585 = vadd.xlane.f32.xlu0 (!%p2238_p2), %v3428_v25  ;;  %1587 = vadd.xlane.f32.xlu1 (!%p2238_p2), %v3432_v10 }
 0x2e7   : > { %v1481_v3 = vld [vmem:[#allocation2 + $0x58] sm:$0xff] (!%p2238_p2) }
 0x2e8   : > { %1429 = vst [vmem:[#allocation2 + $0xd8] sm:$0xff] %v1397_v15  ;;  %v2351_v16 = vpop.f32.mrb[56].mxu1  ;;  %v3438_v15 = vadd.f32 (!%p2238_p2), %v3393_v40, %v1510_v9  ;;  %v1524_v9 = vadd.f32 (!%p2238_p2), %v1492_v5, %v1460_v24 }
 0x2e9   : > { %v2352_v18 = vpop.f32.mrb[57].mxu1 }
 0x2ea   : > { %v2353_v19 = vadd.f32 %v2352_v18, %v2351_v16  ;;  %v2354_v20 = vpop.f32.mrb[58].mxu1  ;;  %v1512_v16 = vadd.f32 (!%p2238_p2), %v1480_v13, %v1448_v12  ;;  %v1513_v18 = vadd.f32 (!%p2238_p2), %v1481_v3, %v1449_v14  ;;  %1589 = vadd.xlane.f32.xlu0 (!%p2238_p2), %v3438_v15  ;;  %v1525_v12 = vadd.f32 (!%p2238_p2), %v1493_v7, %v1461_v6  ;;  %v1462_v13 = vld [vmem:[%s3143_s22 + $0xc0] sm:$0xff] (!%p2238_p2)  ;;  %v1463_v3 = vld [vmem:[%s3143_s22 + $0xc8] sm:$0xff] (!%p2238_p2) }
 0x2eb   : > { %v2355_v22 = vpop.f32.mrb[59].mxu1  ;;  %v1494_v14 = vld [vmem:[#allocation2 + $0xc0] sm:$0xff] (!%p2238_p2) }
 0x2ec   : > { %v1398_v23 = vadd.f32 %v2353_v19, %v1045_v17  ;;  %v2356_v26 = vadd.f32 %v2355_v22, %v2354_v20  ;;  %v3442_v17 = vadd.f32 (!%p2238_p2), %v3393_v40, %v1511_v11  ;;  %v1450_v19 = vld [vmem:[%s3143_s22 + $0x60] sm:$0xff] (!%p2238_p2)  ;;  %v1483_v22 = vld [vmem:[#allocation2 + $0x68] sm:$0xff] (!%p2238_p2)  ;;  %v3502_v11 = vadd.f32 (!%p2238_p2), %v3393_v40, %v1523_v2 }
 0x2ed   : > { %v1482_v20 = vld [vmem:[#allocation2 + $0x60] sm:$0xff] (!%p2238_p2) }
 0x2ee   : > { %1430 = vst [vmem:[#allocation2 + $0xe0] sm:$0xff] %v1398_v23  ;;  %v1399_v27 = vadd.f32 %v2356_v26, %v1046_v21  ;;  %v1451_v21 = vld [vmem:[%s3143_s22 + $0x68] sm:$0xff] (!%p2238_p2)  ;;  %v3448_v23 = vadd.f32 (!%p2238_p2), %v3393_v40, %v1512_v16  ;;  %v1514_v26 = vadd.f32 (!%p2238_p2), %v1482_v20, %v1450_v19  ;;  %1591 = vadd.xlane.f32.xlu1 (!%p2238_p2), %v3442_v17 }
 0x2ef   : > { %v1495_v16 = vld [vmem:[#allocation2 + $0xc8] sm:$0xff] (!%p2238_p2)  ;;  %v1526_v19 = vadd.f32 (!%p2238_p2), %v1494_v14, %v1462_v13  ;;  %v3512_v20 = vadd.f32 (!%p2238_p2), %v3393_v40, %v1525_v12 }
 0x2f0   : > { %1431 = vst [vmem:[#allocation2 + $0xe8] sm:$0xff] %v1399_v27  ;;  %v2357_v28 = vpop.f32.mrb[60].mxu1  ;;  %v3452_v27 = vadd.f32 (!%p2238_p2), %v3393_v40, %v1513_v18  ;;  %1593 = vadd.xlane.f32.xlu0 (!%p2238_p2), %v3448_v23  ;;  %v3508_v18 = vadd.f32 (!%p2238_p2), %v3393_v40, %v1524_v9 }
 0x2f1   : > { %v2358_v30 = vpop.f32.mrb[61].mxu1 }
 0x2f2   : > { %v2359_v31 = vadd.f32 %v2358_v30, %v2357_v28  ;;  %v2360_v32 = vpop.f32.mrb[62].mxu1  ;;  %1437 = sbr.rel (%p2238_p2) target bundleno = 1109 (0x455), region = 72  ;;  %v1515_v28 = vadd.f32 (!%p2238_p2), %v1483_v22, %v1451_v21  ;;  %v1484_v30 = vld [vmem:[#allocation2 + $0x70] sm:$0xff] (!%p2238_p2)  ;;  %1595 = vadd.xlane.f32.xlu1 (!%p2238_p2), %v3452_v27  ;;  %v1527_v21 = vadd.f32 (!%p2238_p2), %v1495_v16, %v1463_v3 }
 0x2f3   : > { %v2361_v34 = vpop.f32.mrb[63].mxu1  ;;  %v1464_v22 = vld [vmem:[%s3143_s22 + $0xd0] sm:$0xff] (!%p2238_p2) }
 0x2f4   : > { %v1400_v35 = vadd.f32 %v2359_v31, %v1047_v29  ;;  %v2362_v36 = vadd.f32 %v2361_v34, %v2360_v32  ;;  %v1452_v29 = vld [vmem:[%s3143_s22 + $0x70] sm:$0xff] (!%p2238_p2)  ;;  %v1453_v31 = vld [vmem:[%s3143_s22 + $0x78] sm:$0xff] (!%p2238_p2) }
 0x2f5   : > { %v1485_v32 = vld [vmem:[#allocation2 + $0x78] sm:$0xff] (!%p2238_p2)  ;;  %v1516_v34 = vadd.f32 (!%p2238_p2), %v1484_v30, %v1452_v29  ;;  %v3518_v30 = vadd.f32 (!%p2238_p2), %v3393_v40, %v1526_v19 }
 0x2f6   : > { %1432 = vst [vmem:[#allocation2 + $0xf0] sm:$0xff] %v1400_v35  ;;  %v1401_v37 = vadd.f32 %v2362_v36, %v1048_v33  ;;  %v3458_v33 = vadd.f32 (!%p2238_p2), %v3393_v40, %v1514_v26  ;;  %v3462_v35 = vadd.f32 (!%p2238_p2), %v3393_v40, %v1515_v28  ;;  %v1517_v36 = vadd.f32 (!%p2238_p2), %v1485_v32, %v1453_v31  ;;  %v1496_v26 = vld [vmem:[#allocation2 + $0xd0] sm:$0xff] (!%p2238_p2)  ;;  %v1465_v28 = vld [vmem:[%s3143_s22 + $0xd8] sm:$0xff] (!%p2238_p2) }
 0x2f7   : > { %v3468_v42 = vadd.f32 (!%p2238_p2), %v3393_v40, %v1516_v34  ;;  %v1497_v29 = vld [vmem:[#allocation2 + $0xd8] sm:$0xff] (!%p2238_p2)  ;;  %v1528_v31 = vadd.f32 (!%p2238_p2), %v1496_v26, %v1464_v22  ;;  %v3522_v32 = vadd.f32 (!%p2238_p2), %v3393_v40, %v1527_v21  ;;  %v1499_v39 = vld [vmem:[#allocation2 + $0xe8] sm:$0xff] (!%p2238_p2) }
 0x2f8   : > { %1433 = vst [vmem:[#allocation2 + $0xf8] sm:$0xff] %v1401_v37  ;;  %v1454_v37 = vld [vmem:[%s3143_s22 + $0x80] sm:$0xff] (!%p2238_p2)  ;;  %1597 = vadd.xlane.f32.xlu0 (!%p2238_p2), %v3458_v33  ;;  %1599 = vadd.xlane.f32.xlu1 (!%p2238_p2), %v3462_v35  ;;  %v3472_v44 = vadd.f32 (!%p2238_p2), %v3393_v40, %v1517_v36  ;;  %v1529_v34 = vadd.f32 (!%p2238_p2), %v1497_v29, %v1465_v28 }
 0x2f9   : > { %v1518_v43 = vadd.f32 %v1486_v38, %v1454_v37  ;;  %v1466_v36 = vld [vmem:[%s3143_s22 + $0xe0] sm:$0xff]  ;;  %v1467_v38 = vld [vmem:[%s3143_s22 + $0xe8] sm:$0xff]  ;;  %v3528_v41 = vadd.f32 %v3393_v40, %v1528_v31  ;;  %s3980_s22 = sld [smem:[#allocation24_spill]] }
 0x2fa   : > { %v1498_v37 = vld [vmem:[#allocation2 + $0xe0] sm:$0xff]  ;;  %v3532_v45 = vadd.f32 %v3393_v40, %v1529_v34  ;;  %v1531_v46 = vadd.f32 %v1499_v39, %v1467_v38 }
 0x2fb   : > { %v3478_v51 = vadd.f32 %v3393_v40, %v1518_v43  ;;  %v1530_v43 = vadd.f32 %v1498_v37, %v1466_v36 }
 0x2fc   : > { %1601 = vadd.xlane.f32.xlu0 %v3468_v42  ;;  %1603 = vadd.xlane.f32.xlu1 %v3472_v44  ;;  %v3542_v58 = vadd.f32 %v3393_v40, %v1531_v46 }
 0x2fd   : > { %v1500_v48 = vld [vmem:[#allocation2 + $0xf0] sm:$0xff]  ;;  %v3538_v54 = vadd.f32 %v3393_v40, %v1530_v43 }
 0x2fe   : > { %v1532_v56 = vadd.f32 %v1500_v48, %v1468_v47 }
 0x2ff   : > { %v1501_v52 = vld [vmem:[#allocation2 + $0xf8] sm:$0xff] }
 0x300   : > { %1605 = vadd.xlane.f32.xlu0 %v3478_v51  ;;  %1607 = vadd.xlane.f32.xlu1 %v3482_v53  ;;  %v1533_v60 = vadd.f32 %v1501_v52, %v1469_v50  ;;  %v3546_v61 = vadd.f32 %v3393_v40, %v1532_v56 }
 0x302   : > { %v3550_v63 = vadd.f32 %v3393_v40, %v1533_v60 }
 0x304   : > { %1609 = vadd.xlane.f32.xlu0 %v3488_v62  ;;  %1611 = vadd.xlane.f32.xlu1 %v3492_v0 }
 0x308   : > { %1613 = vadd.xlane.f32.xlu0 %v3498_v8  ;;  %1615 = vadd.xlane.f32.xlu1 %v3502_v11 }
 0x30c   : > { %1617 = vadd.xlane.f32.xlu0 %v3508_v18  ;;  %1619 = vadd.xlane.f32.xlu1 %v3512_v20 }
 0x310   : > { %1621 = vadd.xlane.f32.xlu0 %v3518_v30  ;;  %1623 = vadd.xlane.f32.xlu1 %v3522_v32 }
 0x314   : > { %1625 = vadd.xlane.f32.xlu0 %v3528_v41  ;;  %1627 = vadd.xlane.f32.xlu1 %v3532_v45 }
 0x318   : > { %1629 = vadd.xlane.f32.xlu0 %v3538_v54  ;;  %1631 = vadd.xlane.f32.xlu1 %v3542_v58 }
 0x31c   : > { %1633 = vadd.xlane.f32.xlu0 %v3546_v61  ;;  %1635 = vadd.xlane.f32.xlu1 %v3550_v63 }
 0x35d   : > { %v1574_v2 = vpop.xlane.xlu0 %1573 }
 0x35e   : > { %v1638_v24 = vmul.f32 0.0078125, %v1574_v2 }
 0x360   : > { %v3555_v7 = vsub.f32 %v3399_v49, %v1638_v24 }
 0x362   : > { %v1702_v40 = vmul.f32 %v3555_v7, %v3555_v7 }
 0x363   : > { %v1578_v5 = vpop.xlane.xlu1 %1577 }
 0x364   : > { %v1640_v6 = vmul.f32 0.0078125, %v1578_v5  ;;  %1734 = vadd.xlane.f32.xlu0 %v1702_v40 }
 0x365   : > { %v1576_v12 = vpop.xlane.xlu0 %1575 }
 0x366   : > { %v3558_v9 = vsub.f32 %v3404_v55, %v1640_v6  ;;  %v1639_v13 = vmul.f32 0.0078125, %v1576_v12 }
 0x367   : > { %v1580_v14 = vpop.xlane.xlu1 %1579 }
 0x368   : > { %v1641_v3 = vmul.f32 0.0078125, %v1580_v14  ;;  %v3563_v16 = vsub.f32 %v3408_v57, %v1639_v13  ;;  %v1704_v19 = vmul.f32 %v3558_v9, %v3558_v9 }
 0x36a   : > { %v3568_v49 = vsub.f32 %v3412_v59, %v1641_v3  ;;  %v1703_v22 = vmul.f32 %v3563_v16, %v3563_v16  ;;  %1738 = vadd.xlane.f32.xlu0 %v1704_v19 }
 0x36b   : > { %v1582_v21 = vpop.xlane.xlu0 %1581 }
 0x36c   : > { %v1642_v55 = vmul.f32 0.0078125, %v1582_v21  ;;  %1736 = vadd.xlane.f32.xlu1 %v1703_v22  ;;  %v1705_v57 = vmul.f32 %v3568_v49, %v3568_v49 }
 0x36d   : > { %v1584_v26 = vpop.xlane.xlu1 %1583 }
 0x36e   : > { %v1643_v28 = vmul.f32 0.0078125, %v1584_v26  ;;  %v3573_v29 = vsub.f32 %v3418_v1, %v1642_v55 }
 0x370   : > { %v3578_v31 = vsub.f32 %v3422_v4, %v1643_v28  ;;  %v1706_v36 = vmul.f32 %v3573_v29, %v3573_v29  ;;  %1740 = vadd.xlane.f32.xlu1 %v1705_v57 }
 0x372   : > { %1742 = vadd.xlane.f32.xlu0 %v1706_v36  ;;  %v1707_v1 = vmul.f32 %v3578_v31, %v3578_v31 }
 0x373   : > { %v1586_v59 = vpop.xlane.xlu0 %1585  ;;  %v1588_v37 = vpop.xlane.xlu1 %1587 }
 0x374   : > { %v1644_v34 = vmul.f32 0.0078125, %v1586_v59  ;;  %v1645_v38 = vmul.f32 0.0078125, %v1588_v37  ;;  %1744 = vadd.xlane.f32.xlu1 %v1707_v1 }
 0x376   : > { %v3583_v39 = vsub.f32 %v3428_v25, %v1644_v34  ;;  %v3588_v43 = vsub.f32 %v3432_v10, %v1645_v38 }
 0x377   : > { %v1590_v4 = vpop.xlane.xlu0 %1589 }
 0x378   : > { %v1646_v46 = vmul.f32 0.0078125, %v1590_v4  ;;  %v1708_v47 = vmul.f32 %v3583_v39, %v3583_v39  ;;  %v1709_v25 = vmul.f32 %v3588_v43, %v3588_v43 }
 0x37a   : > { %v3593_v52 = vsub.f32 %v3438_v15, %v1646_v46  ;;  %1746 = vadd.xlane.f32.xlu0 %v1708_v47  ;;  %1748 = vadd.xlane.f32.xlu1 %v1709_v25 }
 0x37b   : > { %v1592_v48 = vpop.xlane.xlu1 %1591 }
 0x37c   : > { %v1647_v50 = vmul.f32 0.0078125, %v1592_v48  ;;  %v1710_v2 = vmul.f32 %v3593_v52, %v3593_v52 }
 0x37d   : > { %v1594_v10 = vpop.xlane.xlu0 %1593 }
 0x37e   : > { %v3598_v56 = vsub.f32 %v3442_v17, %v1647_v50  ;;  %v1648_v60 = vmul.f32 0.0078125, %v1594_v10  ;;  %1750 = vadd.xlane.f32.xlu0 %v1710_v2 }
 0x37f   : > { %v1596_v24 = vpop.xlane.xlu1 %1595 }
 0x380   : > { %v1649_v5 = vmul.f32 0.0078125, %v1596_v24  ;;  %v3603_v6 = vsub.f32 %v3448_v23, %v1648_v60  ;;  %v1711_v15 = vmul.f32 %v3598_v56, %v3598_v56 }
 0x382   : > { %v3608_v12 = vsub.f32 %v3452_v27, %v1649_v5  ;;  %v1712_v40 = vmul.f32 %v3603_v6, %v3603_v6  ;;  %1752 = vadd.xlane.f32.xlu1 %v1711_v15 }
 0x384   : > { %1754 = vadd.xlane.f32.xlu0 %v1712_v40  ;;  %v1713_v23 = vmul.f32 %v3608_v12, %v3608_v12 }
 0x385   : > { %v1598_v17 = vpop.xlane.xlu0 %1597  ;;  %v1600_v14 = vpop.xlane.xlu1 %1599 }
 0x386   : > { %v1650_v13 = vmul.f32 0.0078125, %v1598_v17  ;;  %v1651_v3 = vmul.f32 0.0078125, %v1600_v14  ;;  %1756 = vadd.xlane.f32.xlu1 %v1713_v23 }
 0x388   : > { %v3613_v19 = vsub.f32 %v3458_v33, %v1650_v13  ;;  %v3618_v21 = vsub.f32 %v3462_v35, %v1651_v3 }
 0x389   : > { %v1602_v27 = vpop.xlane.xlu0 %1601  ;;  %v1604_v26 = vpop.xlane.xlu1 %1603 }
 0x38a   : > { %v1652_v55 = vmul.f32 0.0078125, %v1602_v27  ;;  %v1714_v22 = vmul.f32 %v3613_v19, %v3613_v19  ;;  %v1653_v28 = vmul.f32 0.0078125, %v1604_v26  ;;  %v1715_v33 = vmul.f32 %v3618_v21, %v3618_v21 }
 0x38c   : > { %v3623_v57 = vsub.f32 %v3468_v42, %v1652_v55  ;;  %1758 = vadd.xlane.f32.xlu0 %v1714_v22  ;;  %v3628_v59 = vsub.f32 %v3472_v44, %v1653_v28  ;;  %1760 = vadd.xlane.f32.xlu1 %v1715_v33 }
 0x38d   : > { %v1606_v35 = vpop.xlane.xlu0 %1605  ;;  %v1608_v37 = vpop.xlane.xlu1 %1607 }
 0x38e   : > { %v1654_v34 = vmul.f32 0.0078125, %v1606_v35  ;;  %v1716_v36 = vmul.f32 %v3623_v57, %v3623_v57  ;;  %v1655_v38 = vmul.f32 0.0078125, %v1608_v37  ;;  %v1717_v42 = vmul.f32 %v3628_v59, %v3628_v59 }
 0x390   : > { %v3633_v1 = vsub.f32 %v3478_v51, %v1654_v34  ;;  %1762 = vadd.xlane.f32.xlu0 %v1716_v36  ;;  %v3638_v4 = vsub.f32 %v3482_v53, %v1655_v38  ;;  %1764 = vadd.xlane.f32.xlu1 %v1717_v42 }
 0x391   : > { %v1610_v44 = vpop.xlane.xlu0 %1609  ;;  %v1612_v48 = vpop.xlane.xlu1 %1611 }
 0x392   : > { %v1656_v46 = vmul.f32 0.0078125, %v1610_v44  ;;  %v1718_v47 = vmul.f32 %v3633_v1, %v3633_v1  ;;  %v1657_v50 = vmul.f32 0.0078125, %v1612_v48  ;;  %v1719_v51 = vmul.f32 %v3638_v4, %v3638_v4 }
 0x394   : > { %v3643_v25 = vsub.f32 %v3488_v62, %v1656_v46  ;;  %1766 = vadd.xlane.f32.xlu0 %v1718_v47  ;;  %v3648_v10 = vsub.f32 %v3492_v0, %v1657_v50  ;;  %1768 = vadd.xlane.f32.xlu1 %v1719_v51 }
 0x395   : > { %v1614_v53 = vpop.xlane.xlu0 %1613  ;;  %v1616_v24 = vpop.xlane.xlu1 %1615 }
 0x396   : > { %v1658_v60 = vmul.f32 0.0078125, %v1614_v53  ;;  %v1720_v2 = vmul.f32 %v3643_v25, %v3643_v25  ;;  %v1659_v5 = vmul.f32 0.0078125, %v1616_v24  ;;  %v1721_v62 = vmul.f32 %v3648_v10, %v3648_v10 }
 0x398   : > { %v3653_v15 = vsub.f32 %v3498_v8, %v1658_v60  ;;  %1770 = vadd.xlane.f32.xlu0 %v1720_v2  ;;  %v3658_v17 = vsub.f32 %v3502_v11, %v1659_v5  ;;  %1772 = vadd.xlane.f32.xlu1 %v1721_v62 }
 0x399   : > { %v1618_v0 = vpop.xlane.xlu0 %1617  ;;  %v1620_v14 = vpop.xlane.xlu1 %1619 }
 0x39a   : > { %v1660_v13 = vmul.f32 0.0078125, %v1618_v0  ;;  %v1722_v40 = vmul.f32 %v3653_v15, %v3653_v15  ;;  %v1661_v3 = vmul.f32 0.0078125, %v1620_v14  ;;  %v1723_v8 = vmul.f32 %v3658_v17, %v3658_v17 }
 0x39c   : > { %v3663_v23 = vsub.f32 %v3508_v18, %v1660_v13  ;;  %1774 = vadd.xlane.f32.xlu0 %v1722_v40  ;;  %v3668_v27 = vsub.f32 %v3512_v20, %v1661_v3  ;;  %1776 = vadd.xlane.f32.xlu1 %v1723_v8 }
 0x39d   : > { %v1622_v11 = vpop.xlane.xlu0 %1621  ;;  %v1624_v26 = vpop.xlane.xlu1 %1623 }
 0x39e   : > { %v1662_v55 = vmul.f32 0.0078125, %v1622_v11  ;;  %v1724_v22 = vmul.f32 %v3663_v23, %v3663_v23  ;;  %v1663_v28 = vmul.f32 0.0078125, %v1624_v26  ;;  %v1725_v18 = vmul.f32 %v3668_v27, %v3668_v27 }
 0x3a0   : > { %v3673_v33 = vsub.f32 %v3518_v30, %v1662_v55  ;;  %1778 = vadd.xlane.f32.xlu0 %v1724_v22  ;;  %v3678_v35 = vsub.f32 %v3522_v32, %v1663_v28  ;;  %1780 = vadd.xlane.f32.xlu1 %v1725_v18 }
 0x3a1   : > { %v1626_v20 = vpop.xlane.xlu0 %1625  ;;  %v1628_v37 = vpop.xlane.xlu1 %1627 }
 0x3a2   : > { %v1664_v34 = vmul.f32 0.0078125, %v1626_v20  ;;  %v1726_v36 = vmul.f32 %v3673_v33, %v3673_v33  ;;  %v1665_v38 = vmul.f32 0.0078125, %v1628_v37  ;;  %v1727_v30 = vmul.f32 %v3678_v35, %v3678_v35 }
 0x3a4   : > { %v3683_v42 = vsub.f32 %v3528_v41, %v1664_v34  ;;  %1782 = vadd.xlane.f32.xlu0 %v1726_v36  ;;  %v3688_v44 = vsub.f32 %v3532_v45, %v1665_v38  ;;  %1784 = vadd.xlane.f32.xlu1 %v1727_v30 }
 0x3a5   : > { %v1630_v32 = vpop.xlane.xlu0 %1629  ;;  %v1632_v48 = vpop.xlane.xlu1 %1631 }
 0x3a6   : > { %v1666_v46 = vmul.f32 0.0078125, %v1630_v32  ;;  %v1728_v47 = vmul.f32 %v3683_v42, %v3683_v42  ;;  %v1667_v50 = vmul.f32 0.0078125, %v1632_v48  ;;  %v1729_v41 = vmul.f32 %v3688_v44, %v3688_v44 }
 0x3a8   : > { %v3693_v51 = vsub.f32 %v3538_v54, %v1666_v46  ;;  %1786 = vadd.xlane.f32.xlu0 %v1728_v47  ;;  %v3698_v53 = vsub.f32 %v3542_v58, %v1667_v50  ;;  %1788 = vadd.xlane.f32.xlu1 %v1729_v41  ;;  %v3717_v47 = vld [vmem:[%s3980_s22] ss:$0 sm:$0xff] }
 0x3a9   : > { %v1634_v45 = vpop.xlane.xlu0 %1633  ;;  %v1636_v24 = vpop.xlane.xlu1 %1635 }
 0x3aa   : > { %v1668_v60 = vmul.f32 0.0078125, %v1634_v45  ;;  %v1730_v2 = vmul.f32 %v3693_v51, %v3693_v51  ;;  %v1669_v5 = vmul.f32 0.0078125, %v1636_v24  ;;  %v1731_v54 = vmul.f32 %v3698_v53, %v3698_v53 }
 0x3ac   : > { %v3703_v62 = vsub.f32 %v3546_v61, %v1668_v60  ;;  %1790 = vadd.xlane.f32.xlu0 %v1730_v2  ;;  %v3708_v0 = vsub.f32 %v3550_v63, %v1669_v5  ;;  %1792 = vadd.xlane.f32.xlu1 %v1731_v54  ;;  %v3723_v2 = vld [vmem:[%s3981_s21] ss:$0 sm:$0xff] }
 0x3ae   : > { %v1732_v58 = vmul.f32 %v3703_v62, %v3703_v62  ;;  %v1733_v13 = vmul.f32 %v3708_v0, %v3708_v0 }
 0x3b0   : > { %1794 = vadd.xlane.f32.xlu0 %v1732_v58  ;;  %1796 = vadd.xlane.f32.xlu1 %v1733_v13 }
 0x3f1   : > { %v1735_v40 = vpop.xlane.xlu0 %1734 }
 0x3f2   : > { %v1798_v61 = vmul.f32 0.0078125, %v1735_v40 }
 0x3f4   : > { %v1830_v14 = vadd.f32 1e-05, %v1798_v61 }
 0x3f6   : > { %2524 = vrsqrt.f32 %v1830_v14 }
 0x3f7   : > { %v1739_v8 = vpop.xlane.xlu0 %1738 }
 0x3f8   : > { %v1800_v55 = vmul.f32 0.0078125, %v1739_v8 }
 0x3f9   : > { %v1737_v3 = vpop.xlane.xlu1 %1736 }
 0x3fa   : > { %v1799_v11 = vmul.f32 0.0078125, %v1737_v3  ;;  %v1832_v63 = vadd.f32 1e-05, %v1800_v55 }
 0x3fc   : > { %v1831_v22 = vadd.f32 1e-05, %v1799_v11 }
 0x3fd   : > { %v1741_v26 = vpop.xlane.xlu1 %1740 }
 0x3fe   : > { %2526 = vrsqrt.f32 %v1831_v22  ;;  %v1801_v18 = vmul.f32 0.0078125, %v1741_v26 }
 0x3ff   : > { %v1743_v28 = vpop.xlane.xlu0 %1742  ;;  %2528 = vrsqrt.f32 %v1832_v63 }
 0x400   : > { %v1802_v20 = vmul.f32 0.0078125, %v1743_v28  ;;  %v1833_v34 = vadd.f32 1e-05, %v1801_v18  ;;  %v2525_v46 = vpop.eup %2524 }
 0x401   : > { %v1745_v37 = vpop.xlane.xlu1 %1744  ;;  %v1894_v41 = vmul.f32 %v2525_v46, %v3555_v7 }
 0x402   : > { %v1834_v36 = vadd.f32 1e-05, %v1802_v20  ;;  %2530 = vrsqrt.f32 %v1833_v34  ;;  %v1803_v30 = vmul.f32 0.0078125, %v1745_v37 }
 0x403   : > { %v1933_v54 = vmul.f32 %v3717_v47, %v1894_v41 }
 0x404   : > { %2532 = vrsqrt.f32 %v1834_v36  ;;  %v1835_v48 = vadd.f32 1e-05, %v1803_v30 }
 0x405   : > { %v1972_v7 = vadd.f32 %v3723_v2, %v1933_v54 }
 0x406   : > { %2534 = vrsqrt.f32 %v1835_v48 }
 0x407   : > { %v1747_v38 = vpop.xlane.xlu0 %1746  ;;  %v1749_v45 = vpop.xlane.xlu1 %1748  ;;  %2004 = vst [vmem:[%s3166_s4] sm:$0xff] %v1972_v7 }
 0x408   : > { %v1804_v32 = vmul.f32 0.0078125, %v1747_v38  ;;  %v1805_v24 = vmul.f32 0.0078125, %v1749_v45  ;;  %v2527_v58 = vpop.eup %2526 }
 0x409   : > { %v2529_v61 = vpop.eup %2528  ;;  %v1895_v14 = vmul.f32 %v2527_v58, %v3563_v16 }
 0x40a   : > { %v1836_v50 = vadd.f32 1e-05, %v1804_v32  ;;  %v1837_v13 = vadd.f32 1e-05, %v1805_v24  ;;  %v1896_v11 = vmul.f32 %v2529_v61, %v3558_v9 }
 0x40b   : > { %v1751_v60 = vpop.xlane.xlu0 %1750  ;;  %v1934_v63 = vmul.f32 %v3717_v47, %v1895_v14 }
 0x40c   : > { %v1806_v5 = vmul.f32 0.0078125, %v1751_v60  ;;  %2536 = vrsqrt.f32 %v1836_v50  ;;  %v2531_v26 = vpop.eup %2530  ;;  %v1935_v28 = vmul.f32 %v3717_v47, %v1896_v11 }
 0x40d   : > { %2538 = vrsqrt.f32 %v1837_v13  ;;  %v1973_v16 = vadd.f32 %v3723_v2, %v1934_v63  ;;  %v1897_v36 = vmul.f32 %v2531_v26, %v3568_v49 }
 0x40e   : > { %v1838_v40 = vadd.f32 1e-05, %v1806_v5  ;;  %v2533_v34 = vpop.eup %2532  ;;  %v1974_v38 = vadd.f32 %v3723_v2, %v1935_v28 }
 0x40f   : > { %v1753_v3 = vpop.xlane.xlu1 %1752  ;;  %v1898_v30 = vmul.f32 %v2533_v34, %v3573_v29  ;;  %2005 = vst [vmem:[%s3166_s4 + $0x8] sm:$0xff] %v1973_v16  ;;  %v1936_v46 = vmul.f32 %v3717_v47, %v1897_v36 }
 0x410   : > { %v1807_v55 = vmul.f32 0.0078125, %v1753_v3  ;;  %2540 = vrsqrt.f32 %v1838_v40  ;;  %v2535_v50 = vpop.eup %2534  ;;  %2006 = vst [vmem:[%s3166_s4 + $0x10] sm:$0xff] %v1974_v38 }
 0x411   : > { %v1755_v8 = vpop.xlane.xlu0 %1754  ;;  %v1937_v41 = vmul.f32 %v3717_v47, %v1898_v30  ;;  %v1975_v60 = vadd.f32 %v3723_v2, %v1936_v46  ;;  %v1899_v24 = vmul.f32 %v2535_v50, %v3578_v31 }
 0x412   : > { %v1808_v22 = vmul.f32 0.0078125, %v1755_v8  ;;  %v1839_v18 = vadd.f32 1e-05, %v1807_v55 }
 0x413   : > { %v1757_v9 = vpop.xlane.xlu1 %1756  ;;  %v1976_v58 = vadd.f32 %v3723_v2, %v1937_v41  ;;  %2007 = vst [vmem:[%s3166_s4 + $0x18] sm:$0xff] %v1975_v60  ;;  %v1938_v61 = vmul.f32 %v3717_v47, %v1899_v24 }
 0x414   : > { %v1840_v20 = vadd.f32 1e-05, %v1808_v22  ;;  %2542 = vrsqrt.f32 %v1839_v18  ;;  %v1809_v32 = vmul.f32 0.0078125, %v1757_v9 }
 0x415   : > { %2008 = vst [vmem:[%s3166_s4 + $0x20] sm:$0xff] %v1976_v58  ;;  %v1977_v11 = vadd.f32 %v3723_v2, %v1938_v61 }
 0x416   : > { %2544 = vrsqrt.f32 %v1840_v20  ;;  %v1841_v45 = vadd.f32 1e-05, %v1809_v32  ;;  %v2537_v49 = vpop.eup %2536 }
 0x417   : > { %v1900_v13 = vmul.f32 %v2537_v49, %v3583_v39  ;;  %v2539_v14 = vpop.eup %2538  ;;  %2009 = vst [vmem:[%s3166_s4 + $0x28] sm:$0xff] %v1977_v11 }
 0x418   : > { %2546 = vrsqrt.f32 %v1841_v45  ;;  %v1901_v55 = vmul.f32 %v2539_v14, %v3588_v43 }
 0x419   : > { %v1759_v37 = vpop.xlane.xlu0 %1758  ;;  %v1761_v5 = vpop.xlane.xlu1 %1760  ;;  %v1939_v3 = vmul.f32 %v3717_v47, %v1900_v13 }
 0x41a   : > { %v1810_v48 = vmul.f32 0.0078125, %v1759_v37  ;;  %v1811_v40 = vmul.f32 0.0078125, %v1761_v5  ;;  %v2541_v8 = vpop.eup %2540  ;;  %v1940_v20 = vmul.f32 %v3717_v47, %v1901_v55 }
 0x41b   : > { %v1978_v26 = vadd.f32 %v3723_v2, %v1939_v3  ;;  %v1902_v28 = vmul.f32 %v2541_v8, %v3593_v52 }
 0x41c   : > { %v1842_v29 = vadd.f32 1e-05, %v1810_v48  ;;  %v1843_v31 = vadd.f32 1e-05, %v1811_v40  ;;  %v1979_v37 = vadd.f32 %v3723_v2, %v1940_v20 }
 0x41d   : > { %v1763_v54 = vpop.xlane.xlu0 %1762  ;;  %v1765_v22 = vpop.xlane.xlu1 %1764  ;;  %2010 = vst [vmem:[%s3166_s4 + $0x30] sm:$0xff] %v1978_v26  ;;  %v1941_v36 = vmul.f32 %v3717_v47, %v1902_v28 }
 0x41e   : > { %2548 = vrsqrt.f32 %v1842_v29  ;;  %v1812_v7 = vmul.f32 0.0078125, %v1763_v54  ;;  %v1813_v18 = vmul.f32 0.0078125, %v1765_v22  ;;  %v2543_v16 = vpop.eup %2542  ;;  %2011 = vst [vmem:[%s3166_s4 + $0x38] sm:$0xff] %v1979_v37 }
 0x41f   : > { %2550 = vrsqrt.f32 %v1843_v31  ;;  %v1903_v38 = vmul.f32 %v2543_v16, %v3598_v56  ;;  %v1980_v46 = vadd.f32 %v3723_v2, %v1941_v36 }
 0x420   : > { %v1844_v39 = vadd.f32 1e-05, %v1812_v7  ;;  %v1845_v43 = vadd.f32 1e-05, %v1813_v18  ;;  %v2545_v9 = vpop.eup %2544 }
 0x421   : > { %v1767_v63 = vpop.xlane.xlu0 %1766  ;;  %v1769_v30 = vpop.xlane.xlu1 %1768  ;;  %v1904_v48 = vmul.f32 %v2545_v9, %v3603_v6  ;;  %v1942_v41 = vmul.f32 %v3717_v47, %v1903_v38  ;;  %2012 = vst [vmem:[%s3166_s4 + $0x40] sm:$0xff] %v1980_v46 }
 0x422   : > { %2552 = vrsqrt.f32 %v1844_v39  ;;  %v1814_v34 = vmul.f32 0.0078125, %v1767_v63  ;;  %v1815_v50 = vmul.f32 0.0078125, %v1769_v30  ;;  %v2547_v49 = vpop.eup %2546 }
 0x423   : > { %2554 = vrsqrt.f32 %v1845_v43  ;;  %v1943_v60 = vmul.f32 %v3717_v47, %v1904_v48  ;;  %v1981_v29 = vadd.f32 %v3723_v2, %v1942_v41  ;;  %v1905_v5 = vmul.f32 %v2547_v49, %v3608_v12 }
 0x424   : > { %v1846_v52 = vadd.f32 1e-05, %v1814_v34  ;;  %v1847_v56 = vadd.f32 1e-05, %v1815_v50 }
 0x425   : > { %v1771_v32 = vpop.xlane.xlu0 %1770  ;;  %v1773_v54 = vpop.xlane.xlu1 %1772  ;;  %v1982_v13 = vadd.f32 %v3723_v2, %v1943_v60  ;;  %2013 = vst [vmem:[%s3166_s4 + $0x48] sm:$0xff] %v1981_v29  ;;  %v1944_v7 = vmul.f32 %v3717_v47, %v1905_v5 }
 0x426   : > { %2556 = vrsqrt.f32 %v1846_v52  ;;  %v1816_v45 = vmul.f32 0.0078125, %v1771_v32  ;;  %v1817_v61 = vmul.f32 0.0078125, %v1773_v54 }
 0x427   : > { %2558 = vrsqrt.f32 %v1847_v56  ;;  %2014 = vst [vmem:[%s3166_s4 + $0x50] sm:$0xff] %v1982_v13  ;;  %v1983_v11 = vadd.f32 %v3723_v2, %v1944_v7 }
 0x428   : > { %v2549_v24 = vpop.eup %2548  ;;  %v1848_v6 = vadd.f32 1e-05, %v1816_v45  ;;  %v1849_v12 = vadd.f32 1e-05, %v1817_v61 }
 0x429   : > { %v1775_v58 = vpop.xlane.xlu0 %1774  ;;  %v1906_v40 = vmul.f32 %v2549_v24, %v3613_v19  ;;  %v2551_v3 = vpop.eup %2550  ;;  %2015 = vst [vmem:[%s3166_s4 + $0x58] sm:$0xff] %v1983_v11 }
 0x42a   : > { %2560 = vrsqrt.f32 %v1848_v6  ;;  %v1818_v14 = vmul.f32 0.0078125, %v1775_v58  ;;  %v1907_v55 = vmul.f32 %v2551_v3, %v3618_v21  ;;  %v1777_v39 = vpop.xlane.xlu1 %1776 }
 0x42b   : > { %v1945_v31 = vmul.f32 %v3717_v47, %v1906_v40  ;;  %2562 = vrsqrt.f32 %v1849_v12  ;;  %v1819_v28 = vmul.f32 0.0078125, %v1777_v39 }
 0x42c   : > { %v2553_v8 = vpop.eup %2552  ;;  %v1850_v19 = vadd.f32 1e-05, %v1818_v14  ;;  %v1946_v18 = vmul.f32 %v3717_v47, %v1907_v55 }
 0x42d   : > { %v1779_v22 = vpop.xlane.xlu0 %1778  ;;  %v1984_v63 = vadd.f32 %v3723_v2, %v1945_v31  ;;  %v1908_v26 = vmul.f32 %v2553_v8, %v3623_v57  ;;  %v2555_v34 = vpop.eup %2554  ;;  %v1851_v21 = vadd.f32 1e-05, %v1819_v28 }
 0x42e   : > { %2564 = vrsqrt.f32 %v1850_v19  ;;  %v1820_v20 = vmul.f32 0.0078125, %v1779_v22  ;;  %v1985_v43 = vadd.f32 %v3723_v2, %v1946_v18  ;;  %v1909_v9 = vmul.f32 %v2555_v34, %v3628_v59  ;;  %v1781_v37 = vpop.xlane.xlu1 %1780 }
 0x42f   : > { %2016 = vst [vmem:[%s3166_s4 + $0x60] sm:$0xff] %v1984_v63  ;;  %v1947_v16 = vmul.f32 %v3717_v47, %v1908_v26  ;;  %2566 = vrsqrt.f32 %v1851_v21  ;;  %v1821_v32 = vmul.f32 0.0078125, %v1781_v37 }
 0x430   : > { %v2557_v36 = vpop.eup %2556  ;;  %v1852_v57 = vadd.f32 1e-05, %v1820_v20  ;;  %2017 = vst [vmem:[%s3166_s4 + $0x68] sm:$0xff] %v1985_v43  ;;  %v1948_v46 = vmul.f32 %v3717_v47, %v1909_v9 }
 0x431   : > { %v1783_v38 = vpop.xlane.xlu0 %1782  ;;  %v1986_v52 = vadd.f32 %v3723_v2, %v1947_v16  ;;  %v1910_v30 = vmul.f32 %v2557_v36, %v3633_v1  ;;  %v2559_v50 = vpop.eup %2558  ;;  %v1853_v59 = vadd.f32 1e-05, %v1821_v32 }
 0x432   : > { %2568 = vrsqrt.f32 %v1852_v57  ;;  %v1822_v48 = vmul.f32 0.0078125, %v1783_v38  ;;  %v1987_v49 = vadd.f32 %v3723_v2, %v1948_v46  ;;  %v1911_v60 = vmul.f32 %v2559_v50, %v3638_v4  ;;  %v1785_v56 = vpop.xlane.xlu1 %1784 }
 0x433   : > { %2018 = vst [vmem:[%s3166_s4 + $0x70] sm:$0xff] %v1986_v52  ;;  %v1949_v41 = vmul.f32 %v3717_v47, %v1910_v30  ;;  %2570 = vrsqrt.f32 %v1853_v59  ;;  %v1823_v6 = vmul.f32 0.0078125, %v1785_v56 }
 0x434   : > { %v2561_v45 = vpop.eup %2560  ;;  %v1854_v1 = vadd.f32 1e-05, %v1822_v48  ;;  %2019 = vst [vmem:[%s3166_s4 + $0x78] sm:$0xff] %v1987_v49  ;;  %v1950_v54 = vmul.f32 %v3717_v47, %v1911_v60 }
 0x435   : > { %v1787_v24 = vpop.xlane.xlu0 %1786  ;;  %v1988_v29 = vadd.f32 %v3723_v2, %v1949_v41  ;;  %v1912_v5 = vmul.f32 %v2561_v45, %v3643_v25  ;;  %v2563_v13 = vpop.eup %2562  ;;  %v1855_v4 = vadd.f32 1e-05, %v1823_v6 }
 0x436   : > { %2572 = vrsqrt.f32 %v1854_v1  ;;  %v1824_v58 = vmul.f32 0.0078125, %v1787_v24  ;;  %v1989_v7 = vadd.f32 %v3723_v2, %v1950_v54  ;;  %v1913_v14 = vmul.f32 %v2563_v13, %v3648_v10  ;;  %v1789_v3 = vpop.xlane.xlu1 %1788 }
 0x437   : > { %2020 = vst [vmem:[%s3166_s4 + $0x80] sm:$0xff] %v1988_v29  ;;  %v1951_v40 = vmul.f32 %v3717_v47, %v1912_v5  ;;  %2574 = vrsqrt.f32 %v1855_v4  ;;  %v1825_v11 = vmul.f32 0.0078125, %v1789_v3 }
 0x438   : > { %v2565_v61 = vpop.eup %2564  ;;  %v1856_v25 = vadd.f32 1e-05, %v1824_v58  ;;  %2021 = vst [vmem:[%s3166_s4 + $0x88] sm:$0xff] %v1989_v7  ;;  %v1952_v55 = vmul.f32 %v3717_v47, %v1913_v14 }
 0x439   : > { %v1791_v31 = vpop.xlane.xlu0 %1790  ;;  %v1990_v12 = vadd.f32 %v3723_v2, %v1951_v40  ;;  %v1914_v8 = vmul.f32 %v2565_v61, %v3653_v15  ;;  %v2567_v39 = vpop.eup %2566  ;;  %v1857_v10 = vadd.f32 1e-05, %v1825_v11 }
 0x43a   : > { %2576 = vrsqrt.f32 %v1856_v25  ;;  %v1826_v19 = vmul.f32 0.0078125, %v1791_v31  ;;  %v1991_v26 = vadd.f32 %v3723_v2, %v1952_v55  ;;  %v1915_v28 = vmul.f32 %v2567_v39, %v3658_v17  ;;  %v1793_v18 = vpop.xlane.xlu1 %1792 }
 0x43b   : > { %2022 = vst [vmem:[%s3166_s4 + $0x90] sm:$0xff] %v1990_v12  ;;  %v1953_v22 = vmul.f32 %v3717_v47, %v1914_v8  ;;  %2578 = vrsqrt.f32 %v1857_v10  ;;  %v1827_v21 = vmul.f32 0.0078125, %v1793_v18 }
 0x43c   : > { %v2569_v63 = vpop.eup %2568  ;;  %v1858_v15 = vadd.f32 1e-05, %v1826_v19  ;;  %2023 = vst [vmem:[%s3166_s4 + $0x98] sm:$0xff] %v1991_v26  ;;  %v1954_v36 = vmul.f32 %v3717_v47, %v1915_v28 }
 0x43d   : > { %v1795_v20 = vpop.xlane.xlu0 %1794  ;;  %v1992_v34 = vadd.f32 %v3723_v2, %v1953_v22  ;;  %v1916_v16 = vmul.f32 %v2569_v63, %v3663_v23  ;;  %v2571_v9 = vpop.eup %2570  ;;  %v1859_v57 = vadd.f32 1e-05, %v1827_v21 }
 0x43e   : > { %2580 = vrsqrt.f32 %v1858_v15  ;;  %v1828_v43 = vmul.f32 0.0078125, %v1795_v20  ;;  %v1993_v38 = vadd.f32 %v3723_v2, %v1954_v36  ;;  %v1917_v52 = vmul.f32 %v2571_v9, %v3668_v27  ;;  %v1797_v30 = vpop.xlane.xlu1 %1796 }
 0x43f   : > { %2024 = vst [vmem:[%s3166_s4 + $0xa0] sm:$0xff] %v1992_v34  ;;  %v1955_v17 = vmul.f32 %v3717_v47, %v1916_v16  ;;  %2582 = vrsqrt.f32 %v1859_v57  ;;  %v1829_v48 = vmul.f32 0.0078125, %v1797_v30 }
 0x440   : > { %v2573_v37 = vpop.eup %2572  ;;  %v1860_v23 = vadd.f32 1e-05, %v1828_v43  ;;  %2025 = vst [vmem:[%s3166_s4 + $0xa8] sm:$0xff] %v1993_v38  ;;  %v1956_v50 = vmul.f32 %v3717_v47, %v1917_v52 }
 0x441   : > { %v1994_v32 = vadd.f32 %v3723_v2, %v1955_v17  ;;  %v1918_v46 = vmul.f32 %v2573_v37, %v3673_v33  ;;  %v2575_v41 = vpop.eup %2574  ;;  %v1861_v45 = vadd.f32 1e-05, %v1829_v48 }
 0x442   : > { %2584 = vrsqrt.f32 %v1860_v23  ;;  %v1995_v49 = vadd.f32 %v3723_v2, %v1956_v50  ;;  %v1919_v60 = vmul.f32 %v2575_v41, %v3678_v35 }
 0x443   : > { %2026 = vst [vmem:[%s3166_s4 + $0xb0] sm:$0xff] %v1994_v32  ;;  %v1957_v59 = vmul.f32 %v3717_v47, %v1918_v46  ;;  %2586 = vrsqrt.f32 %v1861_v45 }
 0x444   : > { %v2577_v27 = vpop.eup %2576  ;;  %2027 = vst [vmem:[%s3166_s4 + $0xb8] sm:$0xff] %v1995_v49  ;;  %v1958_v56 = vmul.f32 %v3717_v47, %v1919_v60 }
 0x445   : > { %v1996_v33 = vadd.f32 %v3723_v2, %v1957_v59  ;;  %v1920_v1 = vmul.f32 %v2577_v27, %v3683_v42  ;;  %v2579_v24 = vpop.eup %2578 }
 0x446   : > { %v1997_v6 = vadd.f32 %v3723_v2, %v1958_v56  ;;  %v1921_v54 = vmul.f32 %v2579_v24, %v3688_v44 }
 0x447   : > { %2028 = vst [vmem:[%s3166_s4 + $0xc0] sm:$0xff] %v1996_v33  ;;  %v1959_v29 = vmul.f32 %v3717_v47, %v1920_v1 }
 0x448   : > { %v2581_v5 = vpop.eup %2580  ;;  %2029 = vst [vmem:[%s3166_s4 + $0xc8] sm:$0xff] %v1997_v6  ;;  %v1960_v42 = vmul.f32 %v3717_v47, %v1921_v54 }
 0x449   : > { %v1998_v35 = vadd.f32 %v3723_v2, %v1959_v29  ;;  %v1922_v58 = vmul.f32 %v2581_v5, %v3693_v51  ;;  %v2583_v13 = vpop.eup %2582 }
 0x44a   : > { %v1999_v61 = vadd.f32 %v3723_v2, %v1960_v42  ;;  %v1923_v44 = vmul.f32 %v2583_v13, %v3698_v53 }
 0x44b   : > { %2030 = vst [vmem:[%s3166_s4 + $0xd0] sm:$0xff] %v1998_v35  ;;  %v1961_v40 = vmul.f32 %v3717_v47, %v1922_v58 }
 0x44c   : > { %v2585_v4 = vpop.eup %2584  ;;  %2031 = vst [vmem:[%s3166_s4 + $0xd8] sm:$0xff] %v1999_v61  ;;  %v1962_v51 = vmul.f32 %v3717_v47, %v1923_v44 }
 0x44d   : > { %v2000_v7 = vadd.f32 %v3723_v2, %v1961_v40  ;;  %v1924_v14 = vmul.f32 %v2585_v4, %v3703_v62  ;;  %v2587_v25 = vpop.eup %2586 }
 0x44e   : > { %v2001_v31 = vadd.f32 %v3723_v2, %v1962_v51  ;;  %v1925_v12 = vmul.f32 %v2587_v25, %v3708_v0 }
 0x44f   : > { %2032 = vst [vmem:[%s3166_s4 + $0xe0] sm:$0xff] %v2000_v7  ;;  %v1963_v3 = vmul.f32 %v3717_v47, %v1924_v14 }
 0x450   : > { %2033 = vst [vmem:[%s3166_s4 + $0xe8] sm:$0xff] %v2001_v31  ;;  %v1964_v53 = vmul.f32 %v3717_v47, %v1925_v12 }
 0x451   : > { %v2002_v8 = vadd.f32 %v3723_v2, %v1963_v3 }
 0x452   : > { %v2003_v11 = vadd.f32 %v3723_v2, %v1964_v53 }
 0x453   : > { %2034 = vst [vmem:[%s3166_s4 + $0xf0] sm:$0xff] %v2002_v8 }
 0x454   : > { %2035 = vst [vmem:[%s3166_s4 + $0xf8] sm:$0xff] %v2003_v11 }
 0x455 PF: > { %s3982_s8 = sld [smem:[#allocation16_spill]]  ;;  %s2050_s28 = sshll.u32 %s3166_s4, 4  ;;  %s3859_s28 = int_to_ptr.vmem [resolvable:$true] %s2050_s28 }
 0x456   : > { %s3983_s12 = sld [smem:[#allocation26_spill]]  ;;  %s2037_s6 = scalar_lea.sflag [#allocation6], %s3139_s1 }
 0x457   : > { %s2678_s9 = scalar_lea.vmem %s3859_s28, 4096  ;;  %p3985_p11 = scmp.ne.s32.totalorder %s3967_s26, 0 }
 0x458   : > { %p2679_p13 = scmp.ne.s32.totalorder %s3859_s28, %s2678_s9  ;;  %s2816_s29 = smov [#allocation10]  }
 0x459   : > { %s2682_s27 = sshll.u32 %s2816_s29, 4  ;;  %s2683_s27 = int_to_ptr.vmem [resolvable:$false] %s2682_s27 }
 0x45a   : > { %p2680_p6 = pnand %p2679_p13, %p3985_p11  ;;  %s2684_s15 = scalar_lea.vmem %s2683_s27, 8192 }
 0x45b   : > { %s2250_s25 = sshll.u32 %s3982_s8, 12  ;;  %p2685_p1 = scmp.lt.s32.totalorder %s3859_s28, %s2683_s27 }
 0x45c   : > { %s3984_s17 = smov %s3983_s12  ;;  %s3856_s5 = scalar_lea.hbm %s3983_s12, %s2250_s25 }
 0x45d   : > { %p2681_p5 = pneg %p2680_p6  ;;  %p2686_p0 = scmp.lt.s32.totalorder %s2684_s15, %s2678_s9 }
 0x45f   : > { %p2687_p9 = por %p2686_p0, %p2685_p1 }
 0x461   : > { %p2688_p12 = pnand %p2687_p9, %p2681_p5 }
 0x463   : > { %2691 = shalt.err (!%p2688_p12)
}
 0x464   : > { %s2692_s4 = scalar_lea.hbm %s3856_s5, 4096  ;;  %s2696_s22 = scalar_lea.hbm %s3984_s17, 8192 }
 0x465   : > { %p2693_p3 = scmp.ne.s32.totalorder %s3856_s5, %s2692_s4  ;;  %p2697_p8 = scmp.lt.u32.totalorder %s3856_s5, %s3984_s17 }
 0x466   : > { %p2698_p10 = scmp.lt.u32.totalorder %s2696_s22, %s2692_s4  ;;  %p2700_p13 = scmp.lt.u32.totalorder %s2692_s4, %s3856_s5 }
 0x467   : > { %p2694_p4 = pnand %p2693_p3, %p3985_p11 }
 0x468   : > { %p2699_p2 = por %p2698_p10, %p2697_p8 }
 0x469   : > { %p2695_p7 = pneg %p2694_p4 }
 0x46a   : > { %p2701_p6 = por %p2700_p13, %p2699_p2 }
 0x46c   : > { %p2702_p5 = pnand %p2701_p6, %p2695_p7 }
 0x46e   : > { %2705 = shalt.err (!%p2702_p5)
}
 0x46f   : > { %s2817_s21 = smov 128   ;;  %s2818_s8 = smov 8  }
 0x470   : > { %2369 = dma.vmem_to_hbm [thread:$0]  (%p3985_p11), %s3859_s28, 4096, %s3856_s5, %s2037_s6, %s2817_s21, %s2817_s21, %s2818_s8  }
 0x471 PF: > { %p2386_p1 = scmp.ge.s32.totalorder %s2804_s16, 2  ;;  %s2065_s25 = sand.u32 1, %s2776_s10  }
 0x472   : > { %p3986_p0 = scmp.ne.s32.totalorder %s3969_s7, 0  ;;  %s2066_s23 = scalar_lea.sflag [#allocation6], %s2065_s25 }
 0x474   : > { %p2382_p9 = pnand %p2386_p1, %p3986_p0 }
 0x476   : > { %2759 = dma.done.wait (!%p2382_p9), %s2066_s23, 4096  }
 0x477   : > { %2761 = vsyncadd (!%p2382_p9), %s2066_s23, 4294963200  ;;  %s28_s16 = sadd.s32 1, %s2804_s16   ;;  %s3987_s18 = sld [smem:[#allocation14_spill]] }
 0x478   : > { %p25_p12 = scmp.ge.s32.totalorder %s28_s16, 6   ;;  %s3988_s9 = sld [smem:[#allocation19_spill]] }
 0x479   : > { %s3989_s26 = sld [smem:[#allocation15_spill]]  ;;  %s3990_s12 = sld [smem:[#allocation21_spill]] }
 0x47a   : > { %s3991_s5 = sld [smem:[#allocation17_spill]]  ;;  %s3992_s1 = sld [smem:[#allocation18_spill]] }
 0x47b   : > { %s3993_s15 = sld [smem:[#allocation20_spill]]  ;;  %s3994_s29 = smov %s2768_s30 }
 0x47c   : > { %s3996_s10 = smov %s2780_s11  ;;  %s3998_s13 = smov %s2796_s14 }
 0x47d   : > { %s3995_s30 = smov %s3987_s18  ;;  %27 = sbr.rel (!%p25_p12) target bundleno = 18 (0x12), region = 132 }
 0x47f   : > { %s3997_s11 = smov %s3989_s26 }
 0x480   : > { %s3999_s14 = smov %s3992_s1 }
 0x484   :  { %2071 = vsyncpa [#allocation5], 1 }
 0x485   :  { %2073 = vsyncpa [#allocation5 + $0x1], 1 }
 0x486   :  { %2074 = vsyncpa [#allocation8], 1 }
 0x487   :  { %2076 = vsyncpa [#allocation8 + $0x1], 1 }
 0x488   :  { %2077 = vsyncpa [#allocation6], 1 }
 0x489   :  { %2079 = vsyncpa [#allocation6 + $0x1], 1 }

</bundles_post_ra>
